<compile_context>
chip_gen: v5e
topology: v5e:2x2
jax: 0.10.0
libtpu: 0.0.40
codegen_flags: <defaults>
</compile_context>

<pallas_src>
import functools
from collections import namedtuple

import jax
import jax.numpy as jnp
from jax.experimental import pallas as pl
from jax.experimental.pallas import tpu as pltpu

TM = 256                        # row tile for the flattened N*H*W dimension
VMEM_LIMIT = 48 * 1024 * 1024   # explicit scoped-VMEM cap (safe on v5e/v6e/v7x)
ACT_DTYPE = jnp.bfloat16        # activation / weight dtype fed to the MXU


def _round_up(v, m):
    return (v + m - 1) // m * m


# --------------------------------------------------------------------------
# Pallas kernels
# --------------------------------------------------------------------------
def _matmul_bias_kernel(x_ref, w_ref, b_ref, o_ref, *, relu):
    """out = (x @ w_folded) + bias, optional ReLU.  (1x1 conv + folded FrozenBN)"""
    y = jnp.dot(x_ref[...], w_ref[...], preferred_element_type=jnp.float32)
    y = y + b_ref[...]
    if relu:
        y = jnp.maximum(y, 0.0)
    o_ref[...] = y.astype(o_ref.dtype)


def _matmul_bias_add_relu_kernel(x_ref, w_ref, b_ref, r_ref, o_ref):
    """out = relu((x @ w_folded) + bias + residual).  (conv3 + bn3 + skip + relu)"""
    y = jnp.dot(x_ref[...], w_ref[...], preferred_element_type=jnp.float32)
    y = y + b_ref[...] + r_ref[...].astype(jnp.float32)
    o_ref[...] = jnp.maximum(y, 0.0).astype(o_ref.dtype)


def _conv3x3_bias_relu_kernel(x_ref, w_ref, b_ref, o_ref, *, taps, wlen):
    """3x3 conv (stride 1, pad 1) on one image per grid step.

    x_ref: (1, P, Cin) zero-padded image flattened over (H+3, W+2); the 9 taps are
    flat-shifted windows of length wlen = H*(W+2).  w_ref: (9, Cin, Cout) folded weights.
    The 2 junk columns per output row are sliced off in glue.
    """
    xb = x_ref[0]                                      # (P, Cin) bf16, loaded once
    acc = jnp.zeros(o_ref.shape[1:], jnp.float32)      # (wlen, Cout) f32 accumulator
    for k, off in enumerate(taps):                     # 9 MXU matmuls, f32 accumulate
        acc = acc + jnp.dot(xb[off:off + wlen, :], w_ref[k],
                            preferred_element_type=jnp.float32)
    y = jnp.maximum(acc + b_ref[...], 0.0)
    o_ref[0] = y.astype(o_ref.dtype)


# --------------------------------------------------------------------------
# pallas_call wrappers (glue: reshapes / padding / slicing only)
# --------------------------------------------------------------------------
def _conv1x1_call(xm, w, bias, residual=None, *, relu):
    """Fused (M, Cin) @ (Cin, Cout) + bias [+ residual] [+ relu] with row tiling."""
    M, Cin = xm.shape
    Cout = w.shape[1]
    tm = min(TM, _round_up(M, 8))
    Mp = _round_up(M, tm)
    pad = Mp - M
    if pad:
        # Keep a uniform, pipelined grid; junk rows are sliced off below.
        xm = jnp.pad(xm, ((0, pad), (0, 0)))
        if residual is not None:
            residual = jnp.pad(residual, ((0, pad), (0, 0)))
    bias2 = bias.reshape(1, Cout)

    if residual is None:
        kernel = functools.partial(_matmul_bias_kernel, relu=relu)
        in_specs = [
            pl.BlockSpec((tm, Cin), lambda i: (i, 0)),
            pl.BlockSpec((Cin, Cout), lambda i: (0, 0)),
            pl.BlockSpec((1, Cout), lambda i: (0, 0)),
        ]
        args = (xm, w, bias2)
    else:
        kernel = _matmul_bias_add_relu_kernel
        in_specs = [
            pl.BlockSpec((tm, Cin), lambda i: (i, 0)),
            pl.BlockSpec((Cin, Cout), lambda i: (0, 0)),
            pl.BlockSpec((1, Cout), lambda i: (0, 0)),
            pl.BlockSpec((tm, Cout), lambda i: (i, 0)),
        ]
        args = (xm, w, bias2, residual)

    y = pl.pallas_call(
        kernel,
        out_shape=jax.ShapeDtypeStruct((Mp, Cout), xm.dtype),
        grid=(Mp // tm,),
        in_specs=in_specs,
        out_specs=pl.BlockSpec((tm, Cout), lambda i: (i, 0)),
        compiler_params=pltpu.CompilerParams(
            dimension_semantics=("parallel",), vmem_limit_bytes=VMEM_LIMIT),
    )(*args)
    return y[:M] if pad else y


def conv1x1_bn(x, w, bias, *, relu=True):
    """1x1 conv (NHWC) + folded FrozenBN bias (+ReLU)."""
    N, H, W, Cin = x.shape
    Cout = w.shape[1]
    y = _conv1x1_call(x.reshape(N * H * W, Cin), w, bias, relu=relu)
    return y.reshape(N, H, W, Cout)


def conv1x1_bn_add_relu(x, w, bias, residual):
    """1x1 conv + folded FrozenBN bias + residual add + ReLU (fused)."""
    N, H, W, Cin = x.shape
    Cout = w.shape[1]
    y = _conv1x1_call(x.reshape(N * H * W, Cin), w, bias,
                      residual.reshape(N * H * W, Cout), relu=True)
    return y.reshape(N, H, W, Cout)


def conv3x3_bn_relu(x, w, bias):
    """3x3 conv, stride 1, pad 1, groups=1, dilation=1 + folded FrozenBN bias + ReLU.

    Pads spatially once (H: (1,2), W: (1,1)), flattens each image to a (H+3)*(W+2) row
    slab, and lets the kernel accumulate the 9 taps as flat-shifted-window matmuls.
    """
    N, H, W, Cin = x.shape
    Cout = w.shape[2]
    Wp = W + 2
    xp = jnp.pad(x, ((0, 0), (1, 2), (1, 1), (0, 0)))      # extra bottom row keeps all
    P = (H + 3) * Wp                                        # shifted windows in-bounds
    xf = xp.reshape(N, P, Cin)
    L = H * Wp
    taps = tuple(dh * Wp + dw for dh in range(3) for dw in range(3))
    kernel = functools.partial(_conv3x3_bias_relu_kernel, taps=taps, wlen=L)
    y = pl.pallas_call(
        kernel,
        out_shape=jax.ShapeDtypeStruct((N, L, Cout), x.dtype),
        grid=(N,),
        in_specs=[
            pl.BlockSpec((1, P, Cin), lambda n: (n, 0, 0)),
            pl.BlockSpec((9, Cin, Cout), lambda n: (0, 0, 0)),
            pl.BlockSpec((1, Cout), lambda n: (0, 0)),
        ],
        out_specs=pl.BlockSpec((1, L, Cout), lambda n: (n, 0, 0)),
        compiler_params=pltpu.CompilerParams(
            dimension_semantics=("parallel",), vmem_limit_bytes=VMEM_LIMIT),
    )(xf, w, bias.reshape(1, Cout))
    # Drop the 2 junk columns per row introduced by the padded-width flattening.
    return y.reshape(N, H, Wp, Cout)[:, :, :W, :]
    # TODO(synk): very large spatial extents would need halo row-tiling instead of a
    # whole image per grid step.


# --------------------------------------------------------------------------
# Parameter construction (deterministic, synthetic; BN folded into weights)
# --------------------------------------------------------------------------
def _kaiming_uniform(key, shape, fan_in):
    # torch kaiming_uniform_(a=1): bound = sqrt(6 / ((1 + a^2) * fan_in)) = sqrt(3/fan_in)
    bound = (3.0 / fan_in) ** 0.5
    return jax.random.uniform(key, shape, minval=-bound, maxval=bound, dtype=jnp.float32)


def _frozen_bn(key, c):
    """FrozenBatchNorm2d folded to (scale, bias): scale = w*rsqrt(var), bias = b - mean*scale."""
    k1, k2, k3, k4 = jax.random.split(key, 4)
    weight = jax.random.uniform(k1, (c,), minval=0.5, maxval=1.5, dtype=jnp.float32)
    bias = jax.random.uniform(k2, (c,), minval=-0.5, maxval=0.5, dtype=jnp.float32)
    running_mean = jax.random.uniform(k3, (c,), minval=-0.5, maxval=0.5, dtype=jnp.float32)
    running_var = jax.random.uniform(k4, (c,), minval=0.5, maxval=1.5, dtype=jnp.float32)
    scale = weight * jax.lax.rsqrt(running_var)
    return scale, bias - running_mean * scale


def _make_bottleneck_params(key, in_c, bott_c, out_c):
    """Conv weights with the FrozenBN scale folded in (stored bf16); biases stay f32."""
    ks = jax.random.split(key, 8)
    w1 = _kaiming_uniform(ks[0], (in_c, bott_c), in_c)                 # 1x1
    s1, b1 = _frozen_bn(ks[1], bott_c)
    w2 = _kaiming_uniform(ks[2], (9, bott_c, bott_c), bott_c * 9)      # 3x3 as 9 taps
    s2, b2 = _frozen_bn(ks[3], bott_c)
    w3 = _kaiming_uniform(ks[4], (bott_c, out_c), bott_c)              # 1x1
    s3, b3 = _frozen_bn(ks[5], out_c)
    p = {
        "w1": (w1 * s1[None, :]).astype(ACT_DTYPE), "b1": b1,
        "w2": (w2 * s2[None, None, :]).astype(ACT_DTYPE), "b2": b2,
        "w3": (w3 * s3[None, :]).astype(ACT_DTYPE), "b3": b3,
    }
    if in_c != out_c:
        wd = _kaiming_uniform(ks[6], (in_c, out_c), in_c)              # downsample 1x1
        sd, bd = _frozen_bn(ks[7], out_c)
        p["wd"] = (wd * sd[None, :]).astype(ACT_DTYPE)
        p["bd"] = bd
    return p


def bottleneck_forward(x, p, stride, stride_in_1x1):
    stride_1x1, stride_3x3 = (stride, 1) if stride_in_1x1 else (1, stride)
    assert stride_3x3 == 1  # TODO(synk): strided 3x3 path (stride_in_1x1=False) not implemented
    if stride_1x1 > 1:
        # Stride-2 subsample computed once and shared by conv1 and the downsample branch.
        # TODO(synk): fold the stride into the kernels' index_map to avoid this copy.
        xs = x[:, ::stride_1x1, ::stride_1x1, :]
    else:
        xs = x
    out = conv1x1_bn(xs, p["w1"], p["b1"], relu=True)
    out = conv3x3_bn_relu(out, p["w2"], p["b2"])
    if "wd" in p:
        identity = conv1x1_bn(xs, p["wd"], p["bd"], relu=False)
    else:
        identity = x
    return conv1x1_bn_add_relu(out, p["w3"], p["b3"], identity)


# --------------------------------------------------------------------------
# ResNetHead (BottleneckWithFixedBatchNorm variant)
# --------------------------------------------------------------------------
class ResNetHeadPallas:
    def __init__(self, key, stages, num_groups=1, width_per_group=64,
                 stride_in_1x1=True, stride_init=None, res2_out_channels=256,
                 dilation=1):
        assert dilation == 1    # TODO(synk): dilation>1 path not implemented
        assert num_groups == 1  # TODO(synk): grouped 3x3 conv (GN/ResNeXt) not implemented
        stage2_relative_factor = 2 ** (stages[0].index - 1)
        stage2_bottleneck_channels = num_groups * width_per_group
        out_channels = res2_out_channels * stage2_relative_factor
        in_channels = out_channels // 2
        bottleneck_channels = stage2_bottleneck_channels * stage2_relative_factor

        self.stride_in_1x1 = stride_in_1x1
        self.out_channels = out_channels
        self.blocks = []  # list of (params, stride) -- same order as nn.Sequential stages
        stride = stride_init
        for stage in stages:
            if not stride:
                stride = int(stage.index > 1) + 1
            blk_stride = stride
            blk_in = in_channels
            for _ in range(stage.block_count):
                key, sub = jax.random.split(key)
                self.blocks.append(
                    (_make_bottleneck_params(sub, blk_in, bottleneck_channels, out_channels),
                     blk_stride))
                blk_stride = 1
                blk_in = out_channels
            stride = None

    def __call__(self, x_nchw):
        # NCHW -> NHWC bf16 for the kernels; back to NCHW f32 at the end.
        x = jnp.transpose(x_nchw, (0, 2, 3, 1)).astype(ACT_DTYPE)
        for params, stride in self.blocks:
            x = bottleneck_forward(x, params, stride, self.stride_in_1x1)
        return jnp.transpose(x, (0, 3, 1, 2)).astype(x_nchw.dtype)


# --------------------------------------------------------------------------
if __name__ == "__main__":
    StageSpec = namedtuple("StageSpec", ["index", "block_count", "return_features"])
    # Small synthetic config: stage index 2, 2 blocks ->
    #   out_channels = 16*2 = 32, in_channels = 16, bottleneck_channels = 8*2 = 16,
    #   first_stride = 2 (stride_init=None, index>1).
    stages = (StageSpec(index=2, block_count=2, return_features=False),)

    key = jax.random.PRNGKey(0)
    k_params, k_x = jax.random.split(key)
    head = ResNetHeadPallas(
        k_params, stages,
        num_groups=1, width_per_group=8,
        stride_in_1x1=True, stride_init=None,
        res2_out_channels=16, dilation=1,
    )

    N, C, H, W = 2, 16, 16, 16  # NCHW, C == in_channels
    x = jax.random.normal(k_x, (N, C, H, W), dtype=jnp.float32)

    fwd = jax.jit(lambda inp: head(inp))
    y = jax.block_until_ready(fwd(x))
    assert y.shape == (N, head.out_channels, H // 2, W // 2), y.shape
    assert bool(jnp.all(y >= 0.0))  # final ReLU
    print("KERNEL_OK")
</pallas_src>

<mosaic_0001>
module attributes {stable_mosaic.version = 11 : i64} {
  func.func @_matmul_bias_kernel(%arg0: i32, %arg1: memref<128x16xbf16, #tpu.memory_space<vmem>>, %arg2: memref<16x32xbf16, #tpu.memory_space<vmem>>, %arg3: memref<1x32xf32, #tpu.memory_space<vmem>>, %arg4: memref<128x32xbf16, #tpu.memory_space<vmem>>) attributes {dimension_semantics = [#tpu.dimension_semantics<parallel>], iteration_bounds = array<i64: 1>, scalar_prefetch = 0 : i64, scratch_operands = 0 : i64, tpu.core_type = #tpu.core_type<tc>, window_params = [{transform_indices = @transform_0, window_bounds = array<i64: 128, 16>}, {pipeline_mode = #tpu.pipeline_mode<synchronous>, transform_indices = @transform_1, window_bounds = array<i64: 16, 32>}, {pipeline_mode = #tpu.pipeline_mode<synchronous>, transform_indices = @transform_2, window_bounds = array<i64: 1, 32>}, {transform_indices = @transform_3, window_bounds = array<i64: 128, 32>}]} {
    %c0 = arith.constant 0 : index
    %c0_0 = arith.constant 0 : index
    %0 = vector.load %arg1[%c0, %c0_0] : memref<128x16xbf16, #tpu.memory_space<vmem>>, vector<128x16xbf16>
    %c0_1 = arith.constant 0 : index
    %c0_2 = arith.constant 0 : index
    %1 = vector.load %arg2[%c0_1, %c0_2] : memref<16x32xbf16, #tpu.memory_space<vmem>>, vector<16x32xbf16>
    %cst = arith.constant dense<0.000000e+00> : vector<128x32xf32>
    %2 = tpu.matmul %0, %1, %cst {dimension_numbers = #tpu.dot_dimension_numbers<[1], [0], [0], [1], [0, 0, 1, 1], [], []>} : vector<128x16xbf16>, vector<16x32xbf16>, vector<128x32xf32> -> vector<128x32xf32>
    %c0_3 = arith.constant 0 : index
    %c0_4 = arith.constant 0 : index
    %3 = vector.load %arg3[%c0_3, %c0_4] : memref<1x32xf32, #tpu.memory_space<vmem>>, vector<1x32xf32>
    %4 = vector.broadcast %3 : vector<1x32xf32> to vector<128x32xf32>
    %5 = arith.addf %2, %4 : vector<128x32xf32>
    %6 = arith.truncf %5 : vector<128x32xf32> to vector<128x32xbf16>
    %c0_5 = arith.constant 0 : index
    %c0_6 = arith.constant 0 : index
    %7 = vector.load %arg4[%c0_5, %c0_6] : memref<128x32xbf16, #tpu.memory_space<vmem>>, vector<128x32xbf16>
    tpu.vector_store %arg4[%c0_5, %c0_6], %6 {strides = array<i32>} : memref<128x32xbf16, #tpu.memory_space<vmem>>, vector<128x32xbf16>,
    return
  }
  func.func @transform_0(%arg0: i32) -> (i32, i32) {
    %c0_i32 = arith.constant 0 : i32
    %c0_i32_0 = arith.constant 0 : i32
    return %arg0, %c0_i32 : i32, i32
  }
  func.func @transform_1(%arg0: i32) -> (i32, i32) {
    %c0_i32 = arith.constant 0 : i32
    %c0_i32_0 = arith.constant 0 : i32
    %c0_i32_1 = arith.constant 0 : i32
    return %c0_i32, %c0_i32_0 : i32, i32
  }
  func.func @transform_2(%arg0: i32) -> (i32, i32) {
    %c0_i32 = arith.constant 0 : i32
    %c0_i32_0 = arith.constant 0 : i32
    %c0_i32_1 = arith.constant 0 : i32
    return %c0_i32, %c0_i32_0 : i32, i32
  }
  func.func @transform_3(%arg0: i32) -> (i32, i32) {
    %c0_i32 = arith.constant 0 : i32
    %c0_i32_0 = arith.constant 0 : i32
    return %arg0, %c0_i32 : i32, i32
  }
}

module attributes {stable_mosaic.version = 11 : i64} {
  func.func @_matmul_bias_kernel(%arg0: i32, %arg1: memref<128x16xbf16, #tpu.memory_space<vmem>>, %arg2: memref<16x16xbf16, #tpu.memory_space<vmem>>, %arg3: memref<1x16xf32, #tpu.memory_space<vmem>>, %arg4: memref<128x16xbf16, #tpu.memory_space<vmem>>) attributes {dimension_semantics = [#tpu.dimension_semantics<parallel>], iteration_bounds = array<i64: 1>, scalar_prefetch = 0 : i64, scratch_operands = 0 : i64, tpu.core_type = #tpu.core_type<tc>, window_params = [{transform_indices = @transform_0, window_bounds = array<i64: 128, 16>}, {pipeline_mode = #tpu.pipeline_mode<synchronous>, transform_indices = @transform_1, window_bounds = array<i64: 16, 16>}, {pipeline_mode = #tpu.pipeline_mode<synchronous>, transform_indices = @transform_2, window_bounds = array<i64: 1, 16>}, {transform_indices = @transform_3, window_bounds = array<i64: 128, 16>}]} {
    %c0 = arith.constant 0 : index
    %c0_0 = arith.constant 0 : index
    %0 = vector.load %arg1[%c0, %c0_0] : memref<128x16xbf16, #tpu.memory_space<vmem>>, vector<128x16xbf16>
    %c0_1 = arith.constant 0 : index
    %c0_2 = arith.constant 0 : index
    %1 = vector.load %arg2[%c0_1, %c0_2] : memref<16x16xbf16, #tpu.memory_space<vmem>>, vector<16x16xbf16>
    %cst = arith.constant dense<0.000000e+00> : vector<128x16xf32>
    %2 = tpu.matmul %0, %1, %cst {dimension_numbers = #tpu.dot_dimension_numbers<[1], [0], [0], [1], [0, 0, 1, 1], [], []>} : vector<128x16xbf16>, vector<16x16xbf16>, vector<128x16xf32> -> vector<128x16xf32>
    %c0_3 = arith.constant 0 : index
    %c0_4 = arith.constant 0 : index
    %3 = vector.load %arg3[%c0_3, %c0_4] : memref<1x16xf32, #tpu.memory_space<vmem>>, vector<1x16xf32>
    %4 = vector.broadcast %3 : vector<1x16xf32> to vector<128x16xf32>
    %5 = arith.addf %2, %4 : vector<128x16xf32>
    %cst_5 = arith.constant 0.000000e+00 : f32
    %6 = vector.broadcast %cst_5 : f32 to vector<128x16xf32>
    %7 = arith.maximumf %5, %6 : vector<128x16xf32>
    %8 = arith.truncf %7 : vector<128x16xf32> to vector<128x16xbf16>
    %c0_6 = arith.constant 0 : index
    %c0_7 = arith.constant 0 : index
    %9 = vector.load %arg4[%c0_6, %c0_7] : memref<128x16xbf16, #tpu.memory_space<vmem>>, vector<128x16xbf16>
    tpu.vector_store %arg4[%c0_6, %c0_7], %8 {strides = array<i32>} : memref<128x16xbf16, #tpu.memory_space<vmem>>, vector<128x16xbf16>,
    return
  }
  func.func @transform_0(%arg0: i32) -> (i32, i32) {
    %c0_i32 = arith.constant 0 : i32
    %c0_i32_0 = arith.constant 0 : i32
    return %arg0, %c0_i32 : i32, i32
  }
  func.func @transform_1(%arg0: i32) -> (i32, i32) {
    %c0_i32 = arith.constant 0 : i32
    %c0_i32_0 = arith.constant 0 : i32
    %c0_i32_1 = arith.constant 0 : i32
    return %c0_i32, %c0_i32_0 : i32, i32
  }
  func.func @transform_2(%arg0: i32) -> (i32, i32) {
    %c0_i32 = arith.constant 0 : i32
    %c0_i32_0 = arith.constant 0 : i32
    %c0_i32_1 = arith.constant 0 : i32
    return %c0_i32, %c0_i32_0 : i32, i32
  }
  func.func @transform_3(%arg0: i32) -> (i32, i32) {
    %c0_i32 = arith.constant 0 : i32
    %c0_i32_0 = arith.constant 0 : i32
    return %arg0, %c0_i32 : i32, i32
  }
}

module attributes {stable_mosaic.version = 11 : i64} {
  func.func @_matmul_bias_add_relu_kernel(%arg0: i32, %arg1: memref<128x16xbf16, #tpu.memory_space<vmem>>, %arg2: memref<16x32xbf16, #tpu.memory_space<vmem>>, %arg3: memref<1x32xf32, #tpu.memory_space<vmem>>, %arg4: memref<128x32xbf16, #tpu.memory_space<vmem>>, %arg5: memref<128x32xbf16, #tpu.memory_space<vmem>>) attributes {dimension_semantics = [#tpu.dimension_semantics<parallel>], iteration_bounds = array<i64: 1>, scalar_prefetch = 0 : i64, scratch_operands = 0 : i64, tpu.core_type = #tpu.core_type<tc>, window_params = [{transform_indices = @transform_0, window_bounds = array<i64: 128, 16>}, {pipeline_mode = #tpu.pipeline_mode<synchronous>, transform_indices = @transform_1, window_bounds = array<i64: 16, 32>}, {pipeline_mode = #tpu.pipeline_mode<synchronous>, transform_indices = @transform_2, window_bounds = array<i64: 1, 32>}, {transform_indices = @transform_3, window_bounds = array<i64: 128, 32>}, {transform_indices = @transform_4, window_bounds = array<i64: 128, 32>}]} {
    %c0 = arith.constant 0 : index
    %c0_0 = arith.constant 0 : index
    %0 = vector.load %arg1[%c0, %c0_0] : memref<128x16xbf16, #tpu.memory_space<vmem>>, vector<128x16xbf16>
    %c0_1 = arith.constant 0 : index
    %c0_2 = arith.constant 0 : index
    %1 = vector.load %arg2[%c0_1, %c0_2] : memref<16x32xbf16, #tpu.memory_space<vmem>>, vector<16x32xbf16>
    %cst = arith.constant dense<0.000000e+00> : vector<128x32xf32>
    %2 = tpu.matmul %0, %1, %cst {dimension_numbers = #tpu.dot_dimension_numbers<[1], [0], [0], [1], [0, 0, 1, 1], [], []>} : vector<128x16xbf16>, vector<16x32xbf16>, vector<128x32xf32> -> vector<128x32xf32>
    %c0_3 = arith.constant 0 : index
    %c0_4 = arith.constant 0 : index
    %3 = vector.load %arg3[%c0_3, %c0_4] : memref<1x32xf32, #tpu.memory_space<vmem>>, vector<1x32xf32>
    %4 = vector.broadcast %3 : vector<1x32xf32> to vector<128x32xf32>
    %5 = arith.addf %2, %4 : vector<128x32xf32>
    %c0_5 = arith.constant 0 : index
    %c0_6 = arith.constant 0 : index
    %6 = vector.load %arg4[%c0_5, %c0_6] : memref<128x32xbf16, #tpu.memory_space<vmem>>, vector<128x32xbf16>
    %7 = arith.extf %6 : vector<128x32xbf16> to vector<128x32xf32>
    %8 = arith.addf %5, %7 : vector<128x32xf32>
    %cst_7 = arith.constant 0.000000e+00 : f32
    %9 = vector.broadcast %cst_7 : f32 to vector<128x32xf32>
    %10 = arith.maximumf %8, %9 : vector<128x32xf32>
    %11 = arith.truncf %10 : vector<128x32xf32> to vector<128x32xbf16>
    %c0_8 = arith.constant 0 : index
    %c0_9 = arith.constant 0 : index
    %12 = vector.load %arg5[%c0_8, %c0_9] : memref<128x32xbf16, #tpu.memory_space<vmem>>, vector<128x32xbf16>
    tpu.vector_store %arg5[%c0_8, %c0_9], %11 {strides = array<i32>} : memref<128x32xbf16, #tpu.memory_space<vmem>>, vector<128x32xbf16>,
    return
  }
  func.func @transform_0(%arg0: i32) -> (i32, i32) {
    %c0_i32 = arith.constant 0 : i32
    %c0_i32_0 = arith.constant 0 : i32
    return %arg0, %c0_i32 : i32, i32
  }
  func.func @transform_1(%arg0: i32) -> (i32, i32) {
    %c0_i32 = arith.constant 0 : i32
    %c0_i32_0 = arith.constant 0 : i32
    %c0_i32_1 = arith.constant 0 : i32
    return %c0_i32, %c0_i32_0 : i32, i32
  }
  func.func @transform_2(%arg0: i32) -> (i32, i32) {
    %c0_i32 = arith.constant 0 : i32
    %c0_i32_0 = arith.constant 0 : i32
    %c0_i32_1 = arith.constant 0 : i32
    return %c0_i32, %c0_i32_0 : i32, i32
  }
  func.func @transform_3(%arg0: i32) -> (i32, i32) {
    %c0_i32 = arith.constant 0 : i32
    %c0_i32_0 = arith.constant 0 : i32
    return %arg0, %c0_i32 : i32, i32
  }
  func.func @transform_4(%arg0: i32) -> (i32, i32) {
    %c0_i32 = arith.constant 0 : i32
    %c0_i32_0 = arith.constant 0 : i32
    return %arg0, %c0_i32 : i32, i32
  }
}

module attributes {stable_mosaic.version = 11 : i64} {
  func.func @_conv3x3_bias_relu_kernel(%arg0: i32, %arg1: memref<1x110x16xbf16, #tpu.memory_space<vmem>>, %arg2: memref<9x16x16xbf16, #tpu.memory_space<vmem>>, %arg3: memref<1x16xf32, #tpu.memory_space<vmem>>, %arg4: memref<1x80x16xbf16, #tpu.memory_space<vmem>>) attributes {dimension_semantics = [#tpu.dimension_semantics<parallel>], iteration_bounds = array<i64: 2>, scalar_prefetch = 0 : i64, scratch_operands = 0 : i64, tpu.core_type = #tpu.core_type<tc>, window_params = [{transform_indices = @transform_0, window_bounds = array<i64: 1, 110, 16>}, {pipeline_mode = #tpu.pipeline_mode<synchronous>, transform_indices = @transform_1, window_bounds = array<i64: 9, 16, 16>}, {pipeline_mode = #tpu.pipeline_mode<synchronous>, transform_indices = @transform_2, window_bounds = array<i64: 1, 16>}, {transform_indices = @transform_3, window_bounds = array<i64: 1, 80, 16>}]} {
    %c0 = arith.constant 0 : index
    %c0_0 = arith.constant 0 : index
    %c0_1 = arith.constant 0 : index
    %0 = vector.load %arg1[%c0, %c0_0, %c0_1] : memref<1x110x16xbf16, #tpu.memory_space<vmem>>, vector<1x110x16xbf16>
    %1 = vector.shape_cast %0 : vector<1x110x16xbf16> to vector<110x16xbf16>
    %cst = arith.constant 0.000000e+00 : f32
    %2 = vector.broadcast %cst : f32 to vector<80x16xf32>
    %3 = vector.extract_strided_slice %1 {offsets = [0, 0], sizes = [80, 16], strides = [1, 1]} : vector<110x16xbf16> to vector<80x16xbf16>
    %c0_2 = arith.constant 0 : index
    %c0_3 = arith.constant 0 : index
    %c0_4 = arith.constant 0 : index
    %4 = vector.load %arg2[%c0_2, %c0_3, %c0_4] : memref<9x16x16xbf16, #tpu.memory_space<vmem>>, vector<1x16x16xbf16>
    %5 = vector.shape_cast %4 : vector<1x16x16xbf16> to vector<16x16xbf16>
    %cst_5 = arith.constant dense<0.000000e+00> : vector<80x16xf32>
    %6 = tpu.matmul %3, %5, %cst_5 {dimension_numbers = #tpu.dot_dimension_numbers<[1], [0], [0], [1], [0, 0, 1, 1], [], []>} : vector<80x16xbf16>, vector<16x16xbf16>, vector<80x16xf32> -> vector<80x16xf32>
    %7 = arith.addf %2, %6 : vector<80x16xf32>
    %8 = vector.extract_strided_slice %1 {offsets = [1, 0], sizes = [80, 16], strides = [1, 1]} : vector<110x16xbf16> to vector<80x16xbf16>
    %c1 = arith.constant 1 : index
    %c0_6 = arith.constant 0 : index
    %c0_7 = arith.constant 0 : index
    %9 = vector.load %arg2[%c1, %c0_6, %c0_7] : memref<9x16x16xbf16, #tpu.memory_space<vmem>>, vector<1x16x16xbf16>
    %10 = vector.shape_cast %9 : vector<1x16x16xbf16> to vector<16x16xbf16>
    %cst_8 = arith.constant dense<0.000000e+00> : vector<80x16xf32>
    %11 = tpu.matmul %8, %10, %cst_8 {dimension_numbers = #tpu.dot_dimension_numbers<[1], [0], [0], [1], [0, 0, 1, 1], [], []>} : vector<80x16xbf16>, vector<16x16xbf16>, vector<80x16xf32> -> vector<80x16xf32>
    %12 = arith.addf %7, %11 : vector<80x16xf32>
    %13 = vector.extract_strided_slice %1 {offsets = [2, 0], sizes = [80, 16], strides = [1, 1]} : vector<110x16xbf16> to vector<80x16xbf16>
    %c2 = arith.constant 2 : index
    %c0_9 = arith.constant 0 : index
    %c0_10 = arith.constant 0 : index
    %14 = vector.load %arg2[%c2, %c0_9, %c0_10] : memref<9x16x16xbf16, #tpu.memory_space<vmem>>, vector<1x16x16xbf16>
    %15 = vector.shape_cast %14 : vector<1x16x16xbf16> to vector<16x16xbf16>
    %cst_11 = arith.constant dense<0.000000e+00> : vector<80x16xf32>
    %16 = tpu.matmul %13, %15, %cst_11 {dimension_numbers = #tpu.dot_dimension_numbers<[1], [0], [0], [1], [0, 0, 1, 1], [], []>} : vector<80x16xbf16>, vector<16x16xbf16>, vector<80x16xf32> -> vector<80x16xf32>
    %17 = arith.addf %12, %16 : vector<80x16xf32>
    %18 = vector.extract_strided_slice %1 {offsets = [10, 0], sizes = [80, 16], strides = [1, 1]} : vector<110x16xbf16> to vector<80x16xbf16>
    %c3 = arith.constant 3 : index
    %c0_12 = arith.constant 0 : index
    %c0_13 = arith.constant 0 : index
    %19 = vector.load %arg2[%c3, %c0_12, %c0_13] : memref<9x16x16xbf16, #tpu.memory_space<vmem>>, vector<1x16x16xbf16>
    %20 = vector.shape_cast %19 : vector<1x16x16xbf16> to vector<16x16xbf16>
    %cst_14 = arith.constant dense<0.000000e+00> : vector<80x16xf32>
    %21 = tpu.matmul %18, %20, %cst_14 {dimension_numbers = #tpu.dot_dimension_numbers<[1], [0], [0], [1], [0, 0, 1, 1], [], []>} : vector<80x16xbf16>, vector<16x16xbf16>, vector<80x16xf32> -> vector<80x16xf32>
    %22 = arith.addf %17, %21 : vector<80x16xf32>
    %23 = vector.extract_strided_slice %1 {offsets = [11, 0], sizes = [80, 16], strides = [1, 1]} : vector<110x16xbf16> to vector<80x16xbf16>
    %c4 = arith.constant 4 : index
    %c0_15 = arith.constant 0 : index
    %c0_16 = arith.constant 0 : index
    %24 = vector.load %arg2[%c4, %c0_15, %c0_16] : memref<9x16x16xbf16, #tpu.memory_space<vmem>>, vector<1x16x16xbf16>
    %25 = vector.shape_cast %24 : vector<1x16x16xbf16> to vector<16x16xbf16>
    %cst_17 = arith.constant dense<0.000000e+00> : vector<80x16xf32>
    %26 = tpu.matmul %23, %25, %cst_17 {dimension_numbers = #tpu.dot_dimension_numbers<[1], [0], [0], [1], [0, 0, 1, 1], [], []>} : vector<80x16xbf16>, vector<16x16xbf16>, vector<80x16xf32> -> vector<80x16xf32>
    %27 = arith.addf %22, %26 : vector<80x16xf32>
    %28 = vector.extract_strided_slice %1 {offsets = [12, 0], sizes = [80, 16], strides = [1, 1]} : vector<110x16xbf16> to vector<80x16xbf16>
    %c5 = arith.constant 5 : index
    %c0_18 = arith.constant 0 : index
    %c0_19 = arith.constant 0 : index
    %29 = vector.load %arg2[%c5, %c0_18, %c0_19] : memref<9x16x16xbf16, #tpu.memory_space<vmem>>, vector<1x16x16xbf16>
    %30 = vector.shape_cast %29 : vector<1x16x16xbf16> to vector<16x16xbf16>
    %cst_20 = arith.constant dense<0.000000e+00> : vector<80x16xf32>
    %31 = tpu.matmul %28, %30, %cst_20 {dimension_numbers = #tpu.dot_dimension_numbers<[1], [0], [0], [1], [0, 0, 1, 1], [], []>} : vector<80x16xbf16>, vector<16x16xbf16>, vector<80x16xf32> -> vector<80x16xf32>
    %32 = arith.addf %27, %31 : vector<80x16xf32>
    %33 = vector.extract_strided_slice %1 {offsets = [20, 0], sizes = [80, 16], strides = [1, 1]} : vector<110x16xbf16> to vector<80x16xbf16>
    %c6 = arith.constant 6 : index
    %c0_21 = arith.constant 0 : index
    %c0_22 = arith.constant 0 : index
    %34 = vector.load %arg2[%c6, %c0_21, %c0_22] : memref<9x16x16xbf16, #tpu.memory_space<vmem>>, vector<1x16x16xbf16>
    %35 = vector.shape_cast %34 : vector<1x16x16xbf16> to vector<16x16xbf16>
    %cst_23 = arith.constant dense<0.000000e+00> : vector<80x16xf32>
    %36 = tpu.matmul %33, %35, %cst_23 {dimension_numbers = #tpu.dot_dimension_numbers<[1], [0], [0], [1], [0, 0, 1, 1], [], []>} : vector<80x16xbf16>, vector<16x16xbf16>, vector<80x16xf32> -> vector<80x16xf32>
    %37 = arith.addf %32, %36 : vector<80x16xf32>
    %38 = vector.extract_strided_slice %1 {offsets = [21, 0], sizes = [80, 16], strides = [1, 1]} : vector<110x16xbf16> to vector<80x16xbf16>
    %c7 = arith.constant 7 : index
    %c0_24 = arith.constant 0 : index
    %c0_25 = arith.constant 0 : index
    %39 = vector.load %arg2[%c7, %c0_24, %c0_25] : memref<9x16x16xbf16, #tpu.memory_space<vmem>>, vector<1x16x16xbf16>
    %40 = vector.shape_cast %39 : vector<1x16x16xbf16> to vector<16x16xbf16>
    %cst_26 = arith.constant dense<0.000000e+00> : vector<80x16xf32>
    %41 = tpu.matmul %38, %40, %cst_26 {dimension_numbers = #tpu.dot_dimension_numbers<[1], [0], [0], [1], [0, 0, 1, 1], [], []>} : vector<80x16xbf16>, vector<16x16xbf16>, vector<80x16xf32> -> vector<80x16xf32>
    %42 = arith.addf %37, %41 : vector<80x16xf32>
    %43 = vector.extract_strided_slice %1 {offsets = [22, 0], sizes = [80, 16], strides = [1, 1]} : vector<110x16xbf16> to vector<80x16xbf16>
    %c8 = arith.constant 8 : index
    %c0_27 = arith.constant 0 : index
    %c0_28 = arith.constant 0 : index
    %44 = vector.load %arg2[%c8, %c0_27, %c0_28] : memref<9x16x16xbf16, #tpu.memory_space<vmem>>, vector<1x16x16xbf16>
    %45 = vector.shape_cast %44 : vector<1x16x16xbf16> to vector<16x16xbf16>
    %cst_29 = arith.constant dense<0.000000e+00> : vector<80x16xf32>
    %46 = tpu.matmul %43, %45, %cst_29 {dimension_numbers = #tpu.dot_dimension_numbers<[1], [0], [0], [1], [0, 0, 1, 1], [], []>} : vector<80x16xbf16>, vector<16x16xbf16>, vector<80x16xf32> -> vector<80x16xf32>
    %47 = arith.addf %42, %46 : vector<80x16xf32>
    %c0_30 = arith.constant 0 : index
    %c0_31 = arith.constant 0 : index
    %48 = vector.load %arg3[%c0_30, %c0_31] : memref<1x16xf32, #tpu.memory_space<vmem>>, vector<1x16xf32>
    %49 = vector.broadcast %48 : vector<1x16xf32> to vector<80x16xf32>
    %50 = arith.addf %47, %49 : vector<80x16xf32>
    %cst_32 = arith.constant 0.000000e+00 : f32
    %51 = vector.broadcast %cst_32 : f32 to vector<80x16xf32>
    %52 = arith.maximumf %50, %51 : vector<80x16xf32>
    %53 = arith.truncf %52 : vector<80x16xf32> to vector<80x16xbf16>
    %c0_33 = arith.constant 0 : index
    %c0_34 = arith.constant 0 : index
    %c0_35 = arith.constant 0 : index
    %54 = vector.load %arg4[%c0_33, %c0_34, %c0_35] : memref<1x80x16xbf16, #tpu.memory_space<vmem>>, vector<1x80x16xbf16>
    %55 = vector.shape_cast %54 : vector<1x80x16xbf16> to vector<80x16xbf16>
    %56 = vector.shape_cast %53 : vector<80x16xbf16> to vector<1x80x16xbf16>
    tpu.vector_store %arg4[%c0_33, %c0_34, %c0_35], %56 {strides = array<i32>} : memref<1x80x16xbf16, #tpu.memory_space<vmem>>, vector<1x80x16xbf16>,
    return
  }
  func.func @transform_0(%arg0: i32) -> (i32, i32, i32) {
    %c0_i32 = arith.constant 0 : i32
    %c0_i32_0 = arith.constant 0 : i32
    %c0_i32_1 = arith.constant 0 : i32
    return %arg0, %c0_i32, %c0_i32_0 : i32, i32, i32
  }
  func.func @transform_1(%arg0: i32) -> (i32, i32, i32) {
    %c0_i32 = arith.constant 0 : i32
    %c0_i32_0 = arith.constant 0 : i32
    %c0_i32_1 = arith.constant 0 : i32
    %c0_i32_2 = arith.constant 0 : i32
    return %c0_i32, %c0_i32_0, %c0_i32_1 : i32, i32, i32
  }
  func.func @transform_2(%arg0: i32) -> (i32, i32) {
    %c0_i32 = arith.constant 0 : i32
    %c0_i32_0 = arith.constant 0 : i32
    %c0_i32_1 = arith.constant 0 : i32
    return %c0_i32, %c0_i32_0 : i32, i32
  }
  func.func @transform_3(%arg0: i32) -> (i32, i32, i32) {
    %c0_i32 = arith.constant 0 : i32
    %c0_i32_0 = arith.constant 0 : i32
    %c0_i32_1 = arith.constant 0 : i32
    return %arg0, %c0_i32, %c0_i32_0 : i32, i32, i32
  }
}

module attributes {stable_mosaic.version = 11 : i64} {
  func.func @_matmul_bias_kernel(%arg0: i32, %arg1: memref<128x32xbf16, #tpu.memory_space<vmem>>, %arg2: memref<32x16xbf16, #tpu.memory_space<vmem>>, %arg3: memref<1x16xf32, #tpu.memory_space<vmem>>, %arg4: memref<128x16xbf16, #tpu.memory_space<vmem>>) attributes {dimension_semantics = [#tpu.dimension_semantics<parallel>], iteration_bounds = array<i64: 1>, scalar_prefetch = 0 : i64, scratch_operands = 0 : i64, tpu.core_type = #tpu.core_type<tc>, window_params = [{transform_indices = @transform_0, window_bounds = array<i64: 128, 32>}, {pipeline_mode = #tpu.pipeline_mode<synchronous>, transform_indices = @transform_1, window_bounds = array<i64: 32, 16>}, {pipeline_mode = #tpu.pipeline_mode<synchronous>, transform_indices = @transform_2, window_bounds = array<i64: 1, 16>}, {transform_indices = @transform_3, window_bounds = array<i64: 128, 16>}]} {
    %c0 = arith.constant 0 : index
    %c0_0 = arith.constant 0 : index
    %0 = vector.load %arg1[%c0, %c0_0] : memref<128x32xbf16, #tpu.memory_space<vmem>>, vector<128x32xbf16>
    %c0_1 = arith.constant 0 : index
    %c0_2 = arith.constant 0 : index
    %1 = vector.load %arg2[%c0_1, %c0_2] : memref<32x16xbf16, #tpu.memory_space<vmem>>, vector<32x16xbf16>
    %cst = arith.constant dense<0.000000e+00> : vector<128x16xf32>
    %2 = tpu.matmul %0, %1, %cst {dimension_numbers = #tpu.dot_dimension_numbers<[1], [0], [0], [1], [0, 0, 1, 1], [], []>} : vector<128x32xbf16>, vector<32x16xbf16>, vector<128x16xf32> -> vector<128x16xf32>
    %c0_3 = arith.constant 0 : index
    %c0_4 = arith.constant 0 : index
    %3 = vector.load %arg3[%c0_3, %c0_4] : memref<1x16xf32, #tpu.memory_space<vmem>>, vector<1x16xf32>
    %4 = vector.broadcast %3 : vector<1x16xf32> to vector<128x16xf32>
    %5 = arith.addf %2, %4 : vector<128x16xf32>
    %cst_5 = arith.constant 0.000000e+00 : f32
    %6 = vector.broadcast %cst_5 : f32 to vector<128x16xf32>
    %7 = arith.maximumf %5, %6 : vector<128x16xf32>
    %8 = arith.truncf %7 : vector<128x16xf32> to vector<128x16xbf16>
    %c0_6 = arith.constant 0 : index
    %c0_7 = arith.constant 0 : index
    %9 = vector.load %arg4[%c0_6, %c0_7] : memref<128x16xbf16, #tpu.memory_space<vmem>>, vector<128x16xbf16>
    tpu.vector_store %arg4[%c0_6, %c0_7], %8 {strides = array<i32>} : memref<128x16xbf16, #tpu.memory_space<vmem>>, vector<128x16xbf16>,
    return
  }
  func.func @transform_0(%arg0: i32) -> (i32, i32) {
    %c0_i32 = arith.constant 0 : i32
    %c0_i32_0 = arith.constant 0 : i32
    return %arg0, %c0_i32 : i32, i32
  }
  func.func @transform_1(%arg0: i32) -> (i32, i32) {
    %c0_i32 = arith.constant 0 : i32
    %c0_i32_0 = arith.constant 0 : i32
    %c0_i32_1 = arith.constant 0 : i32
    return %c0_i32, %c0_i32_0 : i32, i32
  }
  func.func @transform_2(%arg0: i32) -> (i32, i32) {
    %c0_i32 = arith.constant 0 : i32
    %c0_i32_0 = arith.constant 0 : i32
    %c0_i32_1 = arith.constant 0 : i32
    return %c0_i32, %c0_i32_0 : i32, i32
  }
  func.func @transform_3(%arg0: i32) -> (i32, i32) {
    %c0_i32 = arith.constant 0 : i32
    %c0_i32_0 = arith.constant 0 : i32
    return %arg0, %c0_i32 : i32, i32
  }
}

</mosaic_0001>

<bundles_post_ra>
// kernel: _lambda_.7
= control target key start
LH: loop header
LB: loop body
LE: loop exit
PB: predicated region body
PF: predicated region fallthrough
CT: control target
= control target key end

     0   :  { %vm83_vm0 = vcmask 130048   ;;  %vm189_vm1 = vcmask 125952   ;;  %s407_s1 = inlined_call_operand.vmem [shape: bf16[16,16], index: 1, kind: input, shape index: {}]   ;;  %s408_s0 = inlined_call_operand.vmem [shape: bf16[128,16], index: 0, kind: input, shape index: {}]   ;;  %s409_s2 = inlined_call_operand.vmem [shape: f32[1,16], index: 2, kind: input, shape index: {}]   ;;  %s410_s3 = inlined_call_operand.vmem [shape: bf16[128,16], index: 3, kind: output, shape index: {}]  }
   0x1   :  { %v262_v0 = vld [vmem:[%s407_s1] sm:$0xff]  ;;  %v256_v2 = vld [vmem:[%s408_s0 + $0x10] sm:$0xff]  ;;  %v255_v5 = vld [vmem:[%s408_s0 + $0x8] sm:$0xff] }
   0x2   :  { %v254_v1 = vld [vmem:[%s408_s0] sm:$0xff]  ;;  %115 = vmatpush.bf16.msra.mxu0 %v262_v0  ;;  %263 = vmatpush.bf16.msra.mxu1 %v262_v0  ;;  %v260_v4 = vld [vmem:[%s408_s0 + $0x30] sm:$0xff]  ;;  %v257_v6 = vld [vmem:[%s408_s0 + $0x18] sm:$0xff] }
   0x3   :  { %v258_v3 = vld [vmem:[%s408_s0 + $0x20] sm:$0xff]  ;;  %264 = vmatpush.bf16.msra.mxu2 %v262_v0  ;;  %265 = vmatpush.bf16.msra.mxu3 %v262_v0  ;;  %v259_v7 = vld [vmem:[%s408_s0 + $0x28] sm:$0xff]  ;;  %v261_v8 = vld [vmem:[%s408_s0 + $0x38] sm:$0xff] }
   0x4   :  { %v325_v9 = vld [vmem:[%s409_s2] ss:$0 sm:$0xff] }
   0x5   :  { %246 = vmatmul.msk.bf16.vlgmr.msra.gmra.mxu0 %vm83_vm0, %v254_v1  ;;  %248 = vmatmul.msk.bf16.vlgmr.msra.gmra.mxu1 %vm83_vm0, %v256_v2 }
   0x6   :  { %250 = vmatmul.msk.bf16.vlgmr.msra.gmra.mxu2 %vm83_vm0, %v258_v3  ;;  %252 = vmatmul.msk.bf16.vlgmr.msra.gmra.mxu3 %vm83_vm0, %v260_v4 }
  0x15   :  { %247 = vmatmul.msk.bf16.gmra.mxu0 %vm83_vm0, %v255_v5  ;;  %249 = vmatmul.msk.bf16.gmra.mxu1 %vm83_vm0, %v257_v6 }
  0x16   :  { %251 = vmatmul.msk.bf16.gmra.mxu2 %vm83_vm0, %v259_v7  ;;  %253 = vmatmul.msk.bf16.gmra.mxu3 %vm83_vm0, %v261_v8 }
  0x82   :  { %v117_v10 = vpop.f32.mrf.mxu0  ;;  %v127_v11 = vpop.f32.mrf.mxu1 }
  0x83   :  { %v118_v12 = vadd.f32 %v325_v9, %v117_v10  ;;  %v128_v13 = vadd.f32 %v325_v9, %v127_v11 }
  0x85   :  { %v157_v14 = vmax.f32 %v118_v12, 0.0  ;;  %v161_v15 = vmax.f32 %v128_v13, 0.0 }
  0x87   :  { %v173_v16 = vpack.c.bf16 %v157_v14, %v157_v14  ;;  %v177_v17 = vpack.c.bf16 %v161_v15, %v161_v15 }
  0x89   :  { %190 = vst.msk [vmem:[%s410_s3] sm:$0xf] %vm189_vm1, %v173_v16  ;;  %v137_v18 = vpop.f32.mrf.mxu2  ;;  %v147_v19 = vpop.f32.mrf.mxu3 }
  0x8a   :  { %194 = vst.msk [vmem:[%s410_s3 + $0x10] sm:$0xf] %vm189_vm1, %v177_v17  ;;  %v138_v20 = vadd.f32 %v325_v9, %v137_v18  ;;  %v148_v21 = vadd.f32 %v325_v9, %v147_v19  ;;  %v119_v22 = vpop.f32.mrf.mxu0  ;;  %v129_v23 = vpop.f32.mrf.mxu1 }
  0x8b   :  { %v120_v24 = vadd.f32 %v325_v9, %v119_v22  ;;  %v130_v25 = vadd.f32 %v325_v9, %v129_v23 }
  0x8c   :  { %v165_v26 = vmax.f32 %v138_v20, 0.0  ;;  %v169_v27 = vmax.f32 %v148_v21, 0.0 }
  0x8d   :  { %v158_v28 = vmax.f32 %v120_v24, 0.0  ;;  %v162_v29 = vmax.f32 %v130_v25, 0.0 }
  0x8e   :  { %v181_v30 = vpack.c.bf16 %v165_v26, %v165_v26  ;;  %v185_v31 = vpack.c.bf16 %v169_v27, %v169_v27 }
  0x8f   :  { %v174_v32 = vpack.c.bf16 %v158_v28, %v158_v28  ;;  %v178_v33 = vpack.c.bf16 %v162_v29, %v162_v29 }
  0x90   :  { %198 = vst.msk [vmem:[%s410_s3 + $0x20] sm:$0xf] %vm189_vm1, %v181_v30 }
  0x91   :  { %202 = vst.msk [vmem:[%s410_s3 + $0x30] sm:$0xf] %vm189_vm1, %v185_v31  ;;  %v139_v34 = vpop.f32.mrf.mxu2  ;;  %v149_v35 = vpop.f32.mrf.mxu3 }
  0x92   :  { %191 = vst.msk [vmem:[%s410_s3 + $0x4] sm:$0xf] %vm189_vm1, %v174_v32  ;;  %v140_v36 = vadd.f32 %v325_v9, %v139_v34  ;;  %v150_v37 = vadd.f32 %v325_v9, %v149_v35  ;;  %v122_v38 = vpop.f32.mrf.mxu0  ;;  %v132_v39 = vpop.f32.mrf.mxu1 }
  0x93   :  { %195 = vst.msk [vmem:[%s410_s3 + $0x14] sm:$0xf] %vm189_vm1, %v178_v33  ;;  %v123_v40 = vadd.f32 %v325_v9, %v122_v38  ;;  %v133_v41 = vadd.f32 %v325_v9, %v132_v39 }
  0x94   :  { %v166_v42 = vmax.f32 %v140_v36, 0.0  ;;  %v170_v43 = vmax.f32 %v150_v37, 0.0 }
  0x95   :  { %v159_v44 = vmax.f32 %v123_v40, 0.0  ;;  %v163_v45 = vmax.f32 %v133_v41, 0.0 }
  0x96   :  { %v182_v46 = vpack.c.bf16 %v166_v42, %v166_v42  ;;  %v186_v47 = vpack.c.bf16 %v170_v43, %v170_v43 }
  0x97   :  { %v175_v48 = vpack.c.bf16 %v159_v44, %v159_v44  ;;  %v179_v49 = vpack.c.bf16 %v163_v45, %v163_v45 }
  0x98   :  { %199 = vst.msk [vmem:[%s410_s3 + $0x24] sm:$0xf] %vm189_vm1, %v182_v46 }
  0x99   :  { %203 = vst.msk [vmem:[%s410_s3 + $0x34] sm:$0xf] %vm189_vm1, %v186_v47  ;;  %v142_v50 = vpop.f32.mrf.mxu2  ;;  %v152_v51 = vpop.f32.mrf.mxu3 }
  0x9a   :  { %192 = vst.msk [vmem:[%s410_s3 + $0x8] sm:$0xf] %vm189_vm1, %v175_v48  ;;  %v143_v52 = vadd.f32 %v325_v9, %v142_v50  ;;  %v153_v53 = vadd.f32 %v325_v9, %v152_v51  ;;  %v124_v54 = vpop.f32.mrf.mxu0  ;;  %v134_v55 = vpop.f32.mrf.mxu1 }
  0x9b   :  { %196 = vst.msk [vmem:[%s410_s3 + $0x18] sm:$0xf] %vm189_vm1, %v179_v49  ;;  %v125_v56 = vadd.f32 %v325_v9, %v124_v54  ;;  %v135_v57 = vadd.f32 %v325_v9, %v134_v55 }
  0x9c   :  { %v167_v58 = vmax.f32 %v143_v52, 0.0  ;;  %v171_v59 = vmax.f32 %v153_v53, 0.0 }
  0x9d   :  { %v160_v60 = vmax.f32 %v125_v56, 0.0  ;;  %v164_v61 = vmax.f32 %v135_v57, 0.0 }
  0x9e   :  { %v183_v62 = vpack.c.bf16 %v167_v58, %v167_v58  ;;  %v187_v63 = vpack.c.bf16 %v171_v59, %v171_v59 }
  0x9f   :  { %v176_v0 = vpack.c.bf16 %v160_v60, %v160_v60  ;;  %v180_v1 = vpack.c.bf16 %v164_v61, %v164_v61 }
  0xa0   :  { %200 = vst.msk [vmem:[%s410_s3 + $0x28] sm:$0xf] %vm189_vm1, %v183_v62 }
  0xa1   :  { %204 = vst.msk [vmem:[%s410_s3 + $0x38] sm:$0xf] %vm189_vm1, %v187_v63  ;;  %v144_v2 = vpop.f32.mrf.mxu2  ;;  %v154_v3 = vpop.f32.mrf.mxu3 }
  0xa2   :  { %193 = vst.msk [vmem:[%s410_s3 + $0xc] sm:$0xf] %vm189_vm1, %v176_v0  ;;  %v145_v4 = vadd.f32 %v325_v9, %v144_v2  ;;  %v155_v5 = vadd.f32 %v325_v9, %v154_v3 }
  0xa3   :  { %197 = vst.msk [vmem:[%s410_s3 + $0x1c] sm:$0xf] %vm189_vm1, %v180_v1 }
  0xa4   :  { %v168_v6 = vmax.f32 %v145_v4, 0.0  ;;  %v172_v7 = vmax.f32 %v155_v5, 0.0 }
  0xa6   :  { %v184_v8 = vpack.c.bf16 %v168_v6, %v168_v6  ;;  %v188_v10 = vpack.c.bf16 %v172_v7, %v172_v7 }
  0xa8   :  { %201 = vst.msk [vmem:[%s410_s3 + $0x2c] sm:$0xf] %vm189_vm1, %v184_v8 }
  0xa9   :  { %205 = vst.msk [vmem:[%s410_s3 + $0x3c] sm:$0xf] %vm189_vm1, %v188_v10 }

// kernel: _lambda_.9
= control target key start
LH: loop header
LB: loop body
LE: loop exit
PB: predicated region body
PF: predicated region fallthrough
CT: control target
= control target key end

     0   :  { %vm83_vm0 = vcmask 130048   ;;  %vm173_vm1 = vcmask 257024   ;;  %s373_s1 = inlined_call_operand.vmem [shape: bf16[16,32], index: 1, kind: input, shape index: {}]   ;;  %s374_s0 = inlined_call_operand.vmem [shape: bf16[128,16], index: 0, kind: input, shape index: {}]   ;;  %s375_s2 = inlined_call_operand.vmem [shape: f32[1,32], index: 2, kind: input, shape index: {}]   ;;  %s376_s3 = inlined_call_operand.vmem [shape: bf16[128,32], index: 3, kind: output, shape index: {}]  }
   0x1   :  { %v246_v0 = vld [vmem:[%s373_s1] sm:$0xff]  ;;  %v240_v2 = vld [vmem:[%s374_s0 + $0x10] sm:$0xff]  ;;  %v239_v5 = vld [vmem:[%s374_s0 + $0x8] sm:$0xff] }
   0x2   :  { %v238_v1 = vld [vmem:[%s374_s0] sm:$0xff]  ;;  %115 = vmatpush.bf16.msra.mxu0 %v246_v0  ;;  %247 = vmatpush.bf16.msra.mxu1 %v246_v0  ;;  %v244_v4 = vld [vmem:[%s374_s0 + $0x30] sm:$0xff]  ;;  %v241_v6 = vld [vmem:[%s374_s0 + $0x18] sm:$0xff] }
   0x3   :  { %v242_v3 = vld [vmem:[%s374_s0 + $0x20] sm:$0xff]  ;;  %248 = vmatpush.bf16.msra.mxu2 %v246_v0  ;;  %249 = vmatpush.bf16.msra.mxu3 %v246_v0  ;;  %v243_v7 = vld [vmem:[%s374_s0 + $0x28] sm:$0xff]  ;;  %v245_v8 = vld [vmem:[%s374_s0 + $0x38] sm:$0xff] }
   0x4   :  { %v250_v9 = vld [vmem:[%s375_s2] ss:$0 sm:$0xff] }
   0x5   :  { %230 = vmatmul.msk.bf16.vlgmr.msra.gmra.mxu0 %vm83_vm0, %v238_v1  ;;  %232 = vmatmul.msk.bf16.vlgmr.msra.gmra.mxu1 %vm83_vm0, %v240_v2 }
   0x6   :  { %234 = vmatmul.msk.bf16.vlgmr.msra.gmra.mxu2 %vm83_vm0, %v242_v3  ;;  %236 = vmatmul.msk.bf16.vlgmr.msra.gmra.mxu3 %vm83_vm0, %v244_v4 }
  0x15   :  { %231 = vmatmul.msk.bf16.gmra.mxu0 %vm83_vm0, %v239_v5  ;;  %233 = vmatmul.msk.bf16.gmra.mxu1 %vm83_vm0, %v241_v6 }
  0x16   :  { %235 = vmatmul.msk.bf16.gmra.mxu2 %vm83_vm0, %v243_v7  ;;  %237 = vmatmul.msk.bf16.gmra.mxu3 %vm83_vm0, %v245_v8 }
  0x82   :  { %v117_v10 = vpop.f32.mrf.mxu0  ;;  %v127_v11 = vpop.f32.mrf.mxu1 }
  0x83   :  { %v118_v12 = vadd.f32 %v250_v9, %v117_v10  ;;  %v128_v13 = vadd.f32 %v250_v9, %v127_v11 }
  0x85   :  { %v157_v14 = vpack.c.bf16 %v118_v12, %v118_v12  ;;  %v161_v15 = vpack.c.bf16 %v128_v13, %v128_v13 }
  0x87   :  { %174 = vst.msk [vmem:[%s376_s3] sm:$0xf] %vm173_vm1, %v157_v14 }
  0x88   :  { %178 = vst.msk [vmem:[%s376_s3 + $0x10] sm:$0xf] %vm173_vm1, %v161_v15 }
  0x89   :  { %v137_v16 = vpop.f32.mrf.mxu2  ;;  %v147_v17 = vpop.f32.mrf.mxu3 }
  0x8a   :  { %v138_v18 = vadd.f32 %v250_v9, %v137_v16  ;;  %v148_v19 = vadd.f32 %v250_v9, %v147_v17  ;;  %v119_v20 = vpop.f32.mrf.mxu0  ;;  %v129_v21 = vpop.f32.mrf.mxu1 }
  0x8b   :  { %v120_v22 = vadd.f32 %v250_v9, %v119_v20  ;;  %v130_v23 = vadd.f32 %v250_v9, %v129_v21 }
  0x8c   :  { %v165_v24 = vpack.c.bf16 %v138_v18, %v138_v18  ;;  %v169_v25 = vpack.c.bf16 %v148_v19, %v148_v19 }
  0x8d   :  { %v158_v26 = vpack.c.bf16 %v120_v22, %v120_v22  ;;  %v162_v27 = vpack.c.bf16 %v130_v23, %v130_v23 }
  0x8e   :  { %182 = vst.msk [vmem:[%s376_s3 + $0x20] sm:$0xf] %vm173_vm1, %v165_v24 }
  0x8f   :  { %186 = vst.msk [vmem:[%s376_s3 + $0x30] sm:$0xf] %vm173_vm1, %v169_v25 }
  0x90   :  { %175 = vst.msk [vmem:[%s376_s3 + $0x4] sm:$0xf] %vm173_vm1, %v158_v26 }
  0x91   :  { %179 = vst.msk [vmem:[%s376_s3 + $0x14] sm:$0xf] %vm173_vm1, %v162_v27  ;;  %v139_v28 = vpop.f32.mrf.mxu2  ;;  %v149_v29 = vpop.f32.mrf.mxu3 }
  0x92   :  { %v140_v30 = vadd.f32 %v250_v9, %v139_v28  ;;  %v150_v31 = vadd.f32 %v250_v9, %v149_v29  ;;  %v122_v32 = vpop.f32.mrf.mxu0  ;;  %v132_v33 = vpop.f32.mrf.mxu1 }
  0x93   :  { %v123_v34 = vadd.f32 %v250_v9, %v122_v32  ;;  %v133_v35 = vadd.f32 %v250_v9, %v132_v33 }
  0x94   :  { %v166_v36 = vpack.c.bf16 %v140_v30, %v140_v30  ;;  %v170_v37 = vpack.c.bf16 %v150_v31, %v150_v31 }
  0x95   :  { %v159_v38 = vpack.c.bf16 %v123_v34, %v123_v34  ;;  %v163_v39 = vpack.c.bf16 %v133_v35, %v133_v35 }
  0x96   :  { %183 = vst.msk [vmem:[%s376_s3 + $0x24] sm:$0xf] %vm173_vm1, %v166_v36 }
  0x97   :  { %187 = vst.msk [vmem:[%s376_s3 + $0x34] sm:$0xf] %vm173_vm1, %v170_v37 }
  0x98   :  { %176 = vst.msk [vmem:[%s376_s3 + $0x8] sm:$0xf] %vm173_vm1, %v159_v38 }
  0x99   :  { %180 = vst.msk [vmem:[%s376_s3 + $0x18] sm:$0xf] %vm173_vm1, %v163_v39  ;;  %v142_v40 = vpop.f32.mrf.mxu2  ;;  %v152_v41 = vpop.f32.mrf.mxu3 }
  0x9a   :  { %v143_v42 = vadd.f32 %v250_v9, %v142_v40  ;;  %v153_v43 = vadd.f32 %v250_v9, %v152_v41  ;;  %v124_v44 = vpop.f32.mrf.mxu0  ;;  %v134_v45 = vpop.f32.mrf.mxu1 }
  0x9b   :  { %v125_v46 = vadd.f32 %v250_v9, %v124_v44  ;;  %v135_v47 = vadd.f32 %v250_v9, %v134_v45 }
  0x9c   :  { %v167_v48 = vpack.c.bf16 %v143_v42, %v143_v42  ;;  %v171_v49 = vpack.c.bf16 %v153_v43, %v153_v43 }
  0x9d   :  { %v160_v50 = vpack.c.bf16 %v125_v46, %v125_v46  ;;  %v164_v51 = vpack.c.bf16 %v135_v47, %v135_v47 }
  0x9e   :  { %184 = vst.msk [vmem:[%s376_s3 + $0x28] sm:$0xf] %vm173_vm1, %v167_v48 }
  0x9f   :  { %188 = vst.msk [vmem:[%s376_s3 + $0x38] sm:$0xf] %vm173_vm1, %v171_v49 }
  0xa0   :  { %177 = vst.msk [vmem:[%s376_s3 + $0xc] sm:$0xf] %vm173_vm1, %v160_v50 }
  0xa1   :  { %181 = vst.msk [vmem:[%s376_s3 + $0x1c] sm:$0xf] %vm173_vm1, %v164_v51  ;;  %v144_v52 = vpop.f32.mrf.mxu2  ;;  %v154_v53 = vpop.f32.mrf.mxu3 }
  0xa2   :  { %v145_v54 = vadd.f32 %v250_v9, %v144_v52  ;;  %v155_v55 = vadd.f32 %v250_v9, %v154_v53 }
  0xa4   :  { %v168_v56 = vpack.c.bf16 %v145_v54, %v145_v54  ;;  %v172_v57 = vpack.c.bf16 %v155_v55, %v155_v55 }
  0xa6   :  { %185 = vst.msk [vmem:[%s376_s3 + $0x2c] sm:$0xf] %vm173_vm1, %v168_v56 }
  0xa7   :  { %189 = vst.msk [vmem:[%s376_s3 + $0x3c] sm:$0xf] %vm173_vm1, %v172_v57 }

// kernel: _lambda_.10
= control target key start
LH: loop header
LB: loop body
LE: loop exit
PB: predicated region body
PF: predicated region fallthrough
CT: control target
= control target key end

     0   :  { %vm86_vm0 = vcmask 130048   ;;  %vm240_vm1 = vcmask 257024   ;;  %s526_s1 = inlined_call_operand.vmem [shape: bf16[16,32], index: 1, kind: input, shape index: {}]   ;;  %s527_s0 = inlined_call_operand.vmem [shape: bf16[128,16], index: 0, kind: input, shape index: {}]   ;;  %s528_s2 = inlined_call_operand.vmem [shape: f32[1,32], index: 2, kind: input, shape index: {}]   ;;  %s529_s3 = inlined_call_operand.vmem [shape: bf16[128,32], index: 3, kind: input, shape index: {}]   ;;  %s530_s4 = inlined_call_operand.vmem [shape: bf16[128,32], index: 4, kind: output, shape index: {}]  }
   0x1   :  { %v313_v0 = vld [vmem:[%s526_s1] sm:$0xff]  ;;  %v307_v2 = vld [vmem:[%s527_s0 + $0x10] sm:$0xff]  ;;  %v306_v5 = vld [vmem:[%s527_s0 + $0x8] sm:$0xff] }
   0x2   :  { %v305_v1 = vld [vmem:[%s527_s0] sm:$0xff]  ;;  %118 = vmatpush.bf16.msra.mxu0 %v313_v0  ;;  %353 = vmatpush.bf16.msra.mxu1 %v313_v0  ;;  %v311_v4 = vld [vmem:[%s527_s0 + $0x30] sm:$0xff]  ;;  %v308_v6 = vld [vmem:[%s527_s0 + $0x18] sm:$0xff] }
   0x3   :  { %v309_v3 = vld [vmem:[%s527_s0 + $0x20] sm:$0xff]  ;;  %354 = vmatpush.bf16.msra.mxu2 %v313_v0  ;;  %355 = vmatpush.bf16.msra.mxu3 %v313_v0  ;;  %v310_v7 = vld [vmem:[%s527_s0 + $0x28] sm:$0xff]  ;;  %v312_v8 = vld [vmem:[%s527_s0 + $0x38] sm:$0xff] }
   0x4   :  { %v315_v9 = vld [vmem:[%s529_s3] sm:$0xff]   ;;  %v347_v10 = vld [vmem:[%s529_s3 + $0x10] sm:$0xff]   ;;  %v346_v44 = vld [vmem:[%s529_s3 + $0x8] sm:$0xff]  }
   0x5   :  { %297 = vmatmul.msk.bf16.vlgmr.msra.gmra.mxu0 %vm86_vm0, %v305_v1  ;;  %299 = vmatmul.msk.bf16.vlgmr.msra.gmra.mxu1 %vm86_vm0, %v307_v2  ;;  %v426_v11 = vld [vmem:[%s528_s2] ss:$0 sm:$0xff]  ;;  %v316_v12 = vunpack.c.l.bf16 %v315_v9  ;;  %v324_v13 = vunpack.c.l.bf16 %v347_v10  ;;  %v351_v21 = vld [vmem:[%s529_s3 + $0x30] sm:$0xff]   ;;  %v317_v30 = vunpack.c.h.bf16 %v315_v9  ;;  %v325_v31 = vunpack.c.h.bf16 %v347_v10  ;;  %v348_v45 = vld [vmem:[%s529_s3 + $0x18] sm:$0xff]  }
   0x6   :  { %301 = vmatmul.msk.bf16.vlgmr.msra.gmra.mxu2 %vm86_vm0, %v309_v3  ;;  %303 = vmatmul.msk.bf16.vlgmr.msra.gmra.mxu3 %vm86_vm0, %v311_v4  ;;  %v349_v20 = vld [vmem:[%s529_s3 + $0x20] sm:$0xff]   ;;  %v340_v25 = vunpack.c.l.bf16 %v351_v21  ;;  %v341_v51 = vunpack.c.h.bf16 %v351_v21  ;;  %v320_v56 = vunpack.c.l.bf16 %v346_v44  ;;  %v328_v57 = vunpack.c.l.bf16 %v348_v45  ;;  %v350_v4 = vld [vmem:[%s529_s3 + $0x28] sm:$0xff]  }
   0x7   :  { %v332_v24 = vunpack.c.l.bf16 %v349_v20  ;;  %v333_v50 = vunpack.c.h.bf16 %v349_v20  ;;  %v329_v20 = vunpack.c.h.bf16 %v348_v45 }
  0x15   :  { %298 = vmatmul.msk.bf16.gmra.mxu0 %vm86_vm0, %v306_v5  ;;  %300 = vmatmul.msk.bf16.gmra.mxu1 %vm86_vm0, %v308_v6  ;;  %v352_v5 = vld [vmem:[%s529_s3 + $0x38] sm:$0xff]  }
  0x16   :  { %302 = vmatmul.msk.bf16.gmra.mxu2 %vm86_vm0, %v310_v7  ;;  %304 = vmatmul.msk.bf16.gmra.mxu3 %vm86_vm0, %v312_v8 }
  0x82   :  { %v120_v14 = vpop.f32.mrf.mxu0  ;;  %v130_v15 = vpop.f32.mrf.mxu1 }
  0x83   :  { %v121_v16 = vadd.f32 %v426_v11, %v120_v14  ;;  %v131_v17 = vadd.f32 %v426_v11, %v130_v15  ;;  %v344_v14 = vunpack.c.l.bf16 %v352_v5 }
  0x85   :  { %v192_v18 = vadd.f32 %v316_v12, %v121_v16  ;;  %v196_v19 = vadd.f32 %v324_v13, %v131_v17  ;;  %v336_v13 = vunpack.c.l.bf16 %v350_v4 }
  0x87   :  { %v208_v22 = vmax.f32 %v192_v18, 0.0  ;;  %v212_v23 = vmax.f32 %v196_v19, 0.0  ;;  %v321_v19 = vunpack.c.h.bf16 %v346_v44 }
  0x89   :  { %v224_v26 = vpack.c.bf16 %v208_v22, %v208_v22  ;;  %v228_v27 = vpack.c.bf16 %v212_v23, %v212_v23  ;;  %v140_v28 = vpop.f32.mrf.mxu2  ;;  %v150_v29 = vpop.f32.mrf.mxu3 }
  0x8a   :  { %v141_v32 = vadd.f32 %v426_v11, %v140_v28  ;;  %v151_v33 = vadd.f32 %v426_v11, %v150_v29  ;;  %v122_v34 = vpop.f32.mrf.mxu0  ;;  %v132_v35 = vpop.f32.mrf.mxu1 }
  0x8b   :  { %241 = vst.msk [vmem:[%s530_s4] sm:$0xf] %vm240_vm1, %v224_v26  ;;  %v123_v36 = vadd.f32 %v426_v11, %v122_v34  ;;  %v133_v37 = vadd.f32 %v426_v11, %v132_v35 }
  0x8c   :  { %245 = vst.msk [vmem:[%s530_s4 + $0x10] sm:$0xf] %vm240_vm1, %v228_v27  ;;  %v200_v38 = vadd.f32 %v332_v24, %v141_v32  ;;  %v204_v39 = vadd.f32 %v340_v25, %v151_v33 }
  0x8d   :  { %v193_v40 = vadd.f32 %v317_v30, %v123_v36  ;;  %v197_v41 = vadd.f32 %v325_v31, %v133_v37  ;;  %v337_v37 = vunpack.c.h.bf16 %v350_v4 }
  0x8e   :  { %v216_v42 = vmax.f32 %v200_v38, 0.0  ;;  %v220_v43 = vmax.f32 %v204_v39, 0.0  ;;  %v345_v38 = vunpack.c.h.bf16 %v352_v5 }
  0x8f   :  { %v209_v46 = vmax.f32 %v193_v40, 0.0  ;;  %v213_v47 = vmax.f32 %v197_v41, 0.0 }
  0x90   :  { %v232_v48 = vpack.c.bf16 %v216_v42, %v216_v42  ;;  %v236_v49 = vpack.c.bf16 %v220_v43, %v220_v43 }
  0x91   :  { %v225_v52 = vpack.c.bf16 %v209_v46, %v209_v46  ;;  %v229_v53 = vpack.c.bf16 %v213_v47, %v213_v47  ;;  %v142_v54 = vpop.f32.mrf.mxu2  ;;  %v152_v55 = vpop.f32.mrf.mxu3 }
  0x92   :  { %249 = vst.msk [vmem:[%s530_s4 + $0x20] sm:$0xf] %vm240_vm1, %v232_v48  ;;  %v143_v58 = vadd.f32 %v426_v11, %v142_v54  ;;  %v153_v59 = vadd.f32 %v426_v11, %v152_v55  ;;  %v125_v60 = vpop.f32.mrf.mxu0  ;;  %v135_v61 = vpop.f32.mrf.mxu1 }
  0x93   :  { %253 = vst.msk [vmem:[%s530_s4 + $0x30] sm:$0xf] %vm240_vm1, %v236_v49  ;;  %v126_v62 = vadd.f32 %v426_v11, %v125_v60  ;;  %v136_v63 = vadd.f32 %v426_v11, %v135_v61 }
  0x94   :  { %242 = vst.msk [vmem:[%s530_s4 + $0x4] sm:$0xf] %vm240_vm1, %v225_v52  ;;  %v201_v0 = vadd.f32 %v333_v50, %v143_v58  ;;  %v205_v1 = vadd.f32 %v341_v51, %v153_v59 }
  0x95   :  { %246 = vst.msk [vmem:[%s530_s4 + $0x14] sm:$0xf] %vm240_vm1, %v229_v53  ;;  %v194_v2 = vadd.f32 %v320_v56, %v126_v62  ;;  %v198_v3 = vadd.f32 %v328_v57, %v136_v63 }
  0x96   :  { %v217_v6 = vmax.f32 %v201_v0, 0.0  ;;  %v221_v7 = vmax.f32 %v205_v1, 0.0 }
  0x97   :  { %v210_v8 = vmax.f32 %v194_v2, 0.0  ;;  %v214_v9 = vmax.f32 %v198_v3, 0.0 }
  0x98   :  { %v233_v10 = vpack.c.bf16 %v217_v6, %v217_v6  ;;  %v237_v12 = vpack.c.bf16 %v221_v7, %v221_v7 }
  0x99   :  { %v226_v15 = vpack.c.bf16 %v210_v8, %v210_v8  ;;  %v230_v16 = vpack.c.bf16 %v214_v9, %v214_v9  ;;  %v145_v17 = vpop.f32.mrf.mxu2  ;;  %v155_v18 = vpop.f32.mrf.mxu3 }
  0x9a   :  { %250 = vst.msk [vmem:[%s530_s4 + $0x24] sm:$0xf] %vm240_vm1, %v233_v10  ;;  %v146_v21 = vadd.f32 %v426_v11, %v145_v17  ;;  %v156_v22 = vadd.f32 %v426_v11, %v155_v18  ;;  %v127_v23 = vpop.f32.mrf.mxu0  ;;  %v137_v24 = vpop.f32.mrf.mxu1 }
  0x9b   :  { %254 = vst.msk [vmem:[%s530_s4 + $0x34] sm:$0xf] %vm240_vm1, %v237_v12  ;;  %v128_v25 = vadd.f32 %v426_v11, %v127_v23  ;;  %v138_v26 = vadd.f32 %v426_v11, %v137_v24 }
  0x9c   :  { %243 = vst.msk [vmem:[%s530_s4 + $0x8] sm:$0xf] %vm240_vm1, %v226_v15  ;;  %v202_v27 = vadd.f32 %v336_v13, %v146_v21  ;;  %v206_v28 = vadd.f32 %v344_v14, %v156_v22 }
  0x9d   :  { %247 = vst.msk [vmem:[%s530_s4 + $0x18] sm:$0xf] %vm240_vm1, %v230_v16  ;;  %v195_v29 = vadd.f32 %v321_v19, %v128_v25  ;;  %v199_v30 = vadd.f32 %v329_v20, %v138_v26 }
  0x9e   :  { %v218_v31 = vmax.f32 %v202_v27, 0.0  ;;  %v222_v32 = vmax.f32 %v206_v28, 0.0 }
  0x9f   :  { %v211_v33 = vmax.f32 %v195_v29, 0.0  ;;  %v215_v34 = vmax.f32 %v199_v30, 0.0 }
  0xa0   :  { %v234_v35 = vpack.c.bf16 %v218_v31, %v218_v31  ;;  %v238_v36 = vpack.c.bf16 %v222_v32, %v222_v32 }
  0xa1   :  { %v227_v39 = vpack.c.bf16 %v211_v33, %v211_v33  ;;  %v231_v40 = vpack.c.bf16 %v215_v34, %v215_v34  ;;  %v147_v41 = vpop.f32.mrf.mxu2  ;;  %v157_v42 = vpop.f32.mrf.mxu3 }
  0xa2   :  { %251 = vst.msk [vmem:[%s530_s4 + $0x28] sm:$0xf] %vm240_vm1, %v234_v35  ;;  %v148_v43 = vadd.f32 %v426_v11, %v147_v41  ;;  %v158_v44 = vadd.f32 %v426_v11, %v157_v42 }
  0xa3   :  { %255 = vst.msk [vmem:[%s530_s4 + $0x38] sm:$0xf] %vm240_vm1, %v238_v36 }
  0xa4   :  { %244 = vst.msk [vmem:[%s530_s4 + $0xc] sm:$0xf] %vm240_vm1, %v227_v39  ;;  %v203_v45 = vadd.f32 %v337_v37, %v148_v43  ;;  %v207_v46 = vadd.f32 %v345_v38, %v158_v44 }
  0xa5   :  { %248 = vst.msk [vmem:[%s530_s4 + $0x1c] sm:$0xf] %vm240_vm1, %v231_v40 }
  0xa6   :  { %v219_v47 = vmax.f32 %v203_v45, 0.0  ;;  %v223_v48 = vmax.f32 %v207_v46, 0.0 }
  0xa8   :  { %v235_v11 = vpack.c.bf16 %v219_v47, %v219_v47  ;;  %v239_v49 = vpack.c.bf16 %v223_v48, %v223_v48 }
  0xaa   :  { %252 = vst.msk [vmem:[%s530_s4 + $0x2c] sm:$0xf] %vm240_vm1, %v235_v11 }
  0xab   :  { %256 = vst.msk [vmem:[%s530_s4 + $0x3c] sm:$0xf] %vm240_vm1, %v239_v49 }

// kernel: _lambda_.11
= control target key start
LH: loop header
LB: loop body
LE: loop exit
PB: predicated region body
PF: predicated region fallthrough
CT: control target
= control target key end

     0   :  { %vm91_vm0 = vcmask 261120   ;;  %vm197_vm1 = vcmask 125952   ;;  %s426_s1 = inlined_call_operand.vmem [shape: bf16[32,16], index: 1, kind: input, shape index: {}]   ;;  %s427_s0 = inlined_call_operand.vmem [shape: bf16[128,32], index: 0, kind: input, shape index: {}]   ;;  %s428_s2 = inlined_call_operand.vmem [shape: f32[1,16], index: 2, kind: input, shape index: {}]   ;;  %s429_s3 = inlined_call_operand.vmem [shape: bf16[128,16], index: 3, kind: output, shape index: {}]  }
   0x1   :  { %v275_v0 = vld [vmem:[%s426_s1 + $0x8] sm:$0xff]  ;;  %v274_v1 = vld [vmem:[%s426_s1] sm:$0xff]  ;;  %v268_v3 = vld [vmem:[%s427_s0 + $0x10] sm:$0xff] }
   0x2   :  { %122 = vmatpush.bf16.msra.mxu0 %v275_v0  ;;  %276 = vmatpush.bf16.msra.mxu1 %v275_v0  ;;  %v266_v2 = vld [vmem:[%s427_s0] sm:$0xff]  ;;  %v272_v5 = vld [vmem:[%s427_s0 + $0x30] sm:$0xff]  ;;  %v267_v6 = vld [vmem:[%s427_s0 + $0x8] sm:$0xff] }
   0x3   :  { %277 = vmatpush.bf16.msra.mxu2 %v275_v0  ;;  %278 = vmatpush.bf16.msra.mxu3 %v275_v0  ;;  %v270_v4 = vld [vmem:[%s427_s0 + $0x20] sm:$0xff]  ;;  %v269_v7 = vld [vmem:[%s427_s0 + $0x18] sm:$0xff]  ;;  %v271_v8 = vld [vmem:[%s427_s0 + $0x28] sm:$0xff] }
   0x4   :  { %v273_v9 = vld [vmem:[%s427_s0 + $0x38] sm:$0xff]  ;;  %v344_v10 = vld [vmem:[%s428_s2] ss:$0 sm:$0xff] }
   0x6   :  { %123 = vmatpush.bf16.msra.mxu0 %v274_v1  ;;  %279 = vmatpush.bf16.msra.mxu1 %v274_v1 }
   0x7   :  { %280 = vmatpush.bf16.msra.mxu2 %v274_v1  ;;  %281 = vmatpush.bf16.msra.mxu3 %v274_v1 }
   0x9   :  { %258 = vmatmul.msk.bf16.vlgmr.msra.gmra.mxu0 %vm91_vm0, %v266_v2  ;;  %260 = vmatmul.msk.bf16.vlgmr.msra.gmra.mxu1 %vm91_vm0, %v268_v3 }
   0xa   :  { %262 = vmatmul.msk.bf16.vlgmr.msra.gmra.mxu2 %vm91_vm0, %v270_v4  ;;  %264 = vmatmul.msk.bf16.vlgmr.msra.gmra.mxu3 %vm91_vm0, %v272_v5 }
  0x19   :  { %259 = vmatmul.msk.bf16.gmra.mxu0 %vm91_vm0, %v267_v6  ;;  %261 = vmatmul.msk.bf16.gmra.mxu1 %vm91_vm0, %v269_v7 }
  0x1a   :  { %263 = vmatmul.msk.bf16.gmra.mxu2 %vm91_vm0, %v271_v8  ;;  %265 = vmatmul.msk.bf16.gmra.mxu3 %vm91_vm0, %v273_v9 }
  0x86   :  { %v125_v11 = vpop.f32.mrf.mxu0  ;;  %v135_v12 = vpop.f32.mrf.mxu1 }
  0x87   :  { %v126_v13 = vadd.f32 %v344_v10, %v125_v11  ;;  %v136_v14 = vadd.f32 %v344_v10, %v135_v12 }
  0x89   :  { %v165_v15 = vmax.f32 %v126_v13, 0.0  ;;  %v169_v16 = vmax.f32 %v136_v14, 0.0 }
  0x8b   :  { %v181_v17 = vpack.c.bf16 %v165_v15, %v165_v15  ;;  %v185_v18 = vpack.c.bf16 %v169_v16, %v169_v16 }
  0x8d   :  { %198 = vst.msk [vmem:[%s429_s3] sm:$0xf] %vm197_vm1, %v181_v17  ;;  %v145_v19 = vpop.f32.mrf.mxu2  ;;  %v155_v20 = vpop.f32.mrf.mxu3 }
  0x8e   :  { %202 = vst.msk [vmem:[%s429_s3 + $0x10] sm:$0xf] %vm197_vm1, %v185_v18  ;;  %v146_v21 = vadd.f32 %v344_v10, %v145_v19  ;;  %v156_v22 = vadd.f32 %v344_v10, %v155_v20  ;;  %v127_v23 = vpop.f32.mrf.mxu0  ;;  %v137_v24 = vpop.f32.mrf.mxu1 }
  0x8f   :  { %v128_v25 = vadd.f32 %v344_v10, %v127_v23  ;;  %v138_v26 = vadd.f32 %v344_v10, %v137_v24 }
  0x90   :  { %v173_v27 = vmax.f32 %v146_v21, 0.0  ;;  %v177_v28 = vmax.f32 %v156_v22, 0.0 }
  0x91   :  { %v166_v29 = vmax.f32 %v128_v25, 0.0  ;;  %v170_v30 = vmax.f32 %v138_v26, 0.0 }
  0x92   :  { %v189_v31 = vpack.c.bf16 %v173_v27, %v173_v27  ;;  %v193_v32 = vpack.c.bf16 %v177_v28, %v177_v28 }
  0x93   :  { %v182_v33 = vpack.c.bf16 %v166_v29, %v166_v29  ;;  %v186_v34 = vpack.c.bf16 %v170_v30, %v170_v30 }
  0x94   :  { %206 = vst.msk [vmem:[%s429_s3 + $0x20] sm:$0xf] %vm197_vm1, %v189_v31 }
  0x95   :  { %210 = vst.msk [vmem:[%s429_s3 + $0x30] sm:$0xf] %vm197_vm1, %v193_v32  ;;  %v147_v35 = vpop.f32.mrf.mxu2  ;;  %v157_v36 = vpop.f32.mrf.mxu3 }
  0x96   :  { %199 = vst.msk [vmem:[%s429_s3 + $0x4] sm:$0xf] %vm197_vm1, %v182_v33  ;;  %v148_v37 = vadd.f32 %v344_v10, %v147_v35  ;;  %v158_v38 = vadd.f32 %v344_v10, %v157_v36  ;;  %v130_v39 = vpop.f32.mrf.mxu0  ;;  %v140_v40 = vpop.f32.mrf.mxu1 }
  0x97   :  { %203 = vst.msk [vmem:[%s429_s3 + $0x14] sm:$0xf] %vm197_vm1, %v186_v34  ;;  %v131_v41 = vadd.f32 %v344_v10, %v130_v39  ;;  %v141_v42 = vadd.f32 %v344_v10, %v140_v40 }
  0x98   :  { %v174_v43 = vmax.f32 %v148_v37, 0.0  ;;  %v178_v44 = vmax.f32 %v158_v38, 0.0 }
  0x99   :  { %v167_v45 = vmax.f32 %v131_v41, 0.0  ;;  %v171_v46 = vmax.f32 %v141_v42, 0.0 }
  0x9a   :  { %v190_v47 = vpack.c.bf16 %v174_v43, %v174_v43  ;;  %v194_v48 = vpack.c.bf16 %v178_v44, %v178_v44 }
  0x9b   :  { %v183_v49 = vpack.c.bf16 %v167_v45, %v167_v45  ;;  %v187_v50 = vpack.c.bf16 %v171_v46, %v171_v46 }
  0x9c   :  { %207 = vst.msk [vmem:[%s429_s3 + $0x24] sm:$0xf] %vm197_vm1, %v190_v47 }
  0x9d   :  { %211 = vst.msk [vmem:[%s429_s3 + $0x34] sm:$0xf] %vm197_vm1, %v194_v48  ;;  %v150_v51 = vpop.f32.mrf.mxu2  ;;  %v160_v52 = vpop.f32.mrf.mxu3 }
  0x9e   :  { %200 = vst.msk [vmem:[%s429_s3 + $0x8] sm:$0xf] %vm197_vm1, %v183_v49  ;;  %v151_v53 = vadd.f32 %v344_v10, %v150_v51  ;;  %v161_v54 = vadd.f32 %v344_v10, %v160_v52  ;;  %v132_v55 = vpop.f32.mrf.mxu0  ;;  %v142_v56 = vpop.f32.mrf.mxu1 }
  0x9f   :  { %204 = vst.msk [vmem:[%s429_s3 + $0x18] sm:$0xf] %vm197_vm1, %v187_v50  ;;  %v133_v57 = vadd.f32 %v344_v10, %v132_v55  ;;  %v143_v58 = vadd.f32 %v344_v10, %v142_v56 }
  0xa0   :  { %v175_v59 = vmax.f32 %v151_v53, 0.0  ;;  %v179_v60 = vmax.f32 %v161_v54, 0.0 }
  0xa1   :  { %v168_v61 = vmax.f32 %v133_v57, 0.0  ;;  %v172_v62 = vmax.f32 %v143_v58, 0.0 }
  0xa2   :  { %v191_v63 = vpack.c.bf16 %v175_v59, %v175_v59  ;;  %v195_v0 = vpack.c.bf16 %v179_v60, %v179_v60 }
  0xa3   :  { %v184_v1 = vpack.c.bf16 %v168_v61, %v168_v61  ;;  %v188_v2 = vpack.c.bf16 %v172_v62, %v172_v62 }
  0xa4   :  { %208 = vst.msk [vmem:[%s429_s3 + $0x28] sm:$0xf] %vm197_vm1, %v191_v63 }
  0xa5   :  { %212 = vst.msk [vmem:[%s429_s3 + $0x38] sm:$0xf] %vm197_vm1, %v195_v0  ;;  %v152_v3 = vpop.f32.mrf.mxu2  ;;  %v162_v4 = vpop.f32.mrf.mxu3 }
  0xa6   :  { %201 = vst.msk [vmem:[%s429_s3 + $0xc] sm:$0xf] %vm197_vm1, %v184_v1  ;;  %v153_v5 = vadd.f32 %v344_v10, %v152_v3  ;;  %v163_v6 = vadd.f32 %v344_v10, %v162_v4 }
  0xa7   :  { %205 = vst.msk [vmem:[%s429_s3 + $0x1c] sm:$0xf] %vm197_vm1, %v188_v2 }
  0xa8   :  { %v176_v7 = vmax.f32 %v153_v5, 0.0  ;;  %v180_v8 = vmax.f32 %v163_v6, 0.0 }
  0xaa   :  { %v192_v9 = vpack.c.bf16 %v176_v7, %v176_v7  ;;  %v196_v11 = vpack.c.bf16 %v180_v8, %v180_v8 }
  0xac   :  { %209 = vst.msk [vmem:[%s429_s3 + $0x2c] sm:$0xf] %vm197_vm1, %v192_v9 }
  0xad   :  { %213 = vst.msk [vmem:[%s429_s3 + $0x3c] sm:$0xf] %vm197_vm1, %v196_v11 }

// kernel: _lambda_.8
= control target key start
LH: loop header
LB: loop body
LE: loop exit
PB: predicated region body
PF: predicated region fallthrough
CT: control target
= control target key end

     0   :  { %s1317_s12 = smov 0   ;;  %s1666_s0 = inlined_call_operand.vmem [shape: bf16[2,110,16], index: 0, kind: input, shape index: {}]   ;;  %s1667_s1 = inlined_call_operand.vmem [shape: bf16[9,16,16], index: 1, kind: input, shape index: {}]   ;;  %s1668_s2 = inlined_call_operand.vmem [shape: f32[1,16], index: 2, kind: input, shape index: {}]   ;;  %s1669_s3 = inlined_call_operand.vmem [shape: bf16[2,80,16], index: 3, kind: output, shape index: {}]  }
   0x1 LB: > { %s1103_s13 = sadd.s32 4294967295, %s1295_s12   ;;  %p1107_p0 = scmp.ge.s32.totalorder %s1295_s12, 1  ;;  %s1295_s12 = sphi %s1317_s12, %s13_s12  }
   0x2   : > { %p137_p1 = scmp.lt.s32.totalorder %s1295_s12, 3 }
   0x4   : > { %p138_p2 = pnand %p1107_p0, %p137_p1 }
   0x5   : > { %p161_p3 = scmp.lt.s32.totalorder (!%p138_p2), %s1103_s13, 1 }
   0x6   : > { %141 = sbr.rel (%p138_p2) target bundleno = 352 (0x160), region = 32 }
   0xb   : > { %v1210_v0 = vld [vmem:[%s1667_s1 + $0x8] sm:$0xff]  ;;  %v1211_v1 = vld [vmem:[%s1667_s1 + $0x10] sm:$0xff]  ;;  %v1209_v2 = vld [vmem:[%s1667_s1] sm:$0xff]  ;;  %s1671_s13 = smov (!%p161_p3, %s1103_s13), 1  ;;  %vm218_vm0 = vsmask.f32 7424 }
   0xc   : > { %v1212_v3 = vld [vmem:[%s1667_s1 + $0x18] sm:$0xff]  ;;  %1275 = vmatpush.bf16.msra.mxu1 %v1210_v0  ;;  %1276 = vmatpush.bf16.msra.mxu2 %v1210_v0  ;;  %v1213_v4 = vld [vmem:[%s1667_s1 + $0x20] sm:$0xff]  ;;  %s1278_s24 = smul.u32 56, %s1671_s13  ;;  %vm269_vm1 = vcmask 130048   ;;  %v1215_v34 = vld [vmem:[%s1667_s1 + $0x30] sm:$0xff]  ;;  %vm372_vm2 = vcmask 1046528  }
   0xd   : > { %1277 = vmatpush.bf16.msra.mxu3 %v1210_v0  ;;  %292 = vmatpush.bf16.msra.mxu0 %v1210_v0  ;;  %v1216_v35 = vld [vmem:[%s1667_s1 + $0x38] sm:$0xff]  ;;  %v1214_v36 = vld [vmem:[%s1667_s1 + $0x28] sm:$0xff]  ;;  %v1217_v39 = vld [vmem:[%s1667_s1 + $0x40] sm:$0xff]  ;;  %vm539_vm3 = vsmask.f32 6400  ;;  %vm661_vm4 = vcmask 1045504  }
   0xe   : > { %s1346_s27 = scalar_lea.vmem %s1666_s0, %s1278_s24  ;;  %vm824_vm5 = vsmask.f32 5376  ;;  %vm926_vm6 = vcmask 1044480   ;;  %s1279_s11 = smul.u32 40, %s1671_s13  ;;  %vm1037_vm7 = vcmask 125952  }
   0xf   : > { %v1349_v5 = vld [vmem:[%s1346_s27 + $0x8] sm:$0xff]   ;;  %v1352_v6 = vld [vmem:[%s1346_s27 + $0x10] sm:$0xff]   ;;  %v1355_v7 = vld [vmem:[%s1346_s27 + $0x18] sm:$0xff]  }
  0x10   : > { %412 = vmatpush.bf16.msrb.mxu2 %v1211_v1  ;;  %342 = vmatpush.bf16.msrb.mxu1 %v1209_v2  ;;  %v227_v8 = vshll.u32 %v1349_v5, 16  ;;  %v231_v9 = vshrl.u32 %v1349_v5, 16  ;;  %v235_v10 = vshll.u32 %v1352_v6, 16  ;;  %v239_v11 = vshrl.u32 %v1352_v6, 16  ;;  %v1362_v12 = vld [vmem:[%s1346_s27 + $0x20] sm:$0xff]   ;;  %v1365_v13 = vld [vmem:[%s1346_s27 + $0x28] sm:$0xff]   ;;  %s1624_s16 = scalar_lea.vmem %s1669_s3, %s1279_s11 }
  0x11   : > { %499 = vmatpush.bf16.msrb.mxu3 %v1212_v3  ;;  %621 = vmatpush.bf16.msrb.mxu0 %v1213_v4  ;;  %v243_v14 = vshll.u32 %v1355_v7, 16  ;;  %v1369_v15 = vunpack.c.l.b16 %v1365_v13  ;;  %v251_v16 = vshll.u32 %v1362_v12, 16  ;;  %v1377_v19 = vld [vmem:[%s1346_s27] sm:$0xff]   ;;  %v255_v25 = vshrl.u32 %v1362_v12, 16  ;;  %v1420_v42 = vld [vmem:[%s1346_s27 + $0xc] sm:$0xff]   ;;  %v1440_v60 = vld [vmem:[%s1346_s27 + $0x14] sm:$0xff]  }
  0x12   : > { %v229_v17 = vrot.slane %v227_v8, 1  ;;  %v237_v18 = vrot.slane %v235_v10, 1  ;;  %v220_v27 = vshrl.u32 %v1377_v19, 16  ;;  %v222_v28 = vshll.u32 %v1377_v19, 16  ;;  %v1417_v41 = vld [vmem:[%s1346_s27 + $0x4] sm:$0xff]  }
  0x13   : > { %v245_v20 = vrot.slane %v243_v14, 1  ;;  %v1383_v21 = vpack.c.b16 %v1369_v15, %v1369_v15  ;;  %v253_v22 = vrot.slane %v251_v16, 1  ;;  %v247_v43 = vshrl.u32 %v1355_v7, 16 }
  0x14   : > { %v233_v23 = vor.u32 %v231_v9, %v229_v17  ;;  %v241_v24 = vor.u32 %v239_v11, %v237_v18  ;;  %v224_v33 = vrot.slane %v222_v28, 1  ;;  %v541_v44 = vshrl.u32 %v1417_v41, 16 }
  0x15   : > { %v259_v26 = vshll.u32 %v1383_v21, 16  ;;  %v257_v31 = vor.u32 %v255_v25, %v253_v22  ;;  %v544_v45 = vshll.u32 %v1417_v41, 16  ;;  %v549_v46 = vshrl.u32 %v1420_v42, 16 }
  0x16   : > { %v238_v29 = vsel %vm218_vm0, %v233_v23, %v237_v18  ;;  %v246_v30 = vsel %vm218_vm0, %v241_v24, %v245_v20  ;;  %v225_v38 = vor.u32 %v224_v33, %v220_v27  ;;  %v552_v47 = vshll.u32 %v1420_v42, 16 }
  0x17   : > { %1117 = vmatmul.msk.bf16.vlgmr.msra.gmra.mxu1 %vm269_vm1, %v238_v29  ;;  %1118 = vmatmul.msk.bf16.vlgmr.msra.gmra.mxu2 %vm269_vm1, %v246_v30  ;;  %v261_v32 = vrot.slane %v259_v26, 1  ;;  %v249_v48 = vor.u32 %v247_v43, %v245_v20  ;;  %v543_v49 = vrot.slane %v541_v44, 1  ;;  %v546_v50 = vrot.slane %v544_v45, 2 }
  0x18   : > { %784 = vmatpush.bf16.msra.mxu2 %v1215_v34  ;;  %701 = vmatpush.bf16.msra.mxu1 %v1214_v36  ;;  %v230_v40 = vsel %vm218_vm0, %v225_v38, %v229_v17  ;;  %v551_v51 = vrot.slane %v549_v46, 1  ;;  %v554_v52 = vrot.slane %v552_v47, 2  ;;  %v460_v53 = vrot.slane %v1417_v41, 1 }
  0x19   : > { %v262_v37 = vsel %vm218_vm0, %v257_v31, %v261_v32  ;;  %1116 = vmatmul.msk.bf16.vlgmr.msra.gmra.mxu0 %vm269_vm1, %v230_v40  ;;  %v461_v54 = vrot.slane %v1420_v42, 1  ;;  %v254_v55 = vsel %vm218_vm0, %v249_v48, %v253_v22  ;;  %v547_v56 = vor.u32 %v546_v50, %v543_v49 }
  0x1a   : > { %1120 = vmatmul.msk.bf16.vlgmr.msra.gmra.mxu3 %vm269_vm1, %v262_v37  ;;  %966 = vmatpush.bf16.msra.mxu0 %v1217_v39  ;;  %v555_v57 = vor.u32 %v554_v52, %v551_v51  ;;  %v558_v61 = vshrl.u32 %v1440_v60, 16  ;;  %v561_v62 = vshll.u32 %v1440_v60, 16  ;;  %v373_v63 = vrot.slane %v1377_v19, 1 }
  0x1b   : > { %886 = vmatpush.bf16.msra.mxu3 %v1216_v35  ;;  %v462_v58 = vsel %vm372_vm2, %v460_v53, %v461_v54  ;;  %v374_v0 = vrot.slane %v1349_v5, 1  ;;  %v463_v3 = vrot.slane %v1440_v60, 1  ;;  %v376_v24 = vrot.slane %v1352_v6, 1 }
  0x1c   : > { %v556_v59 = vsel %vm539_vm3, %v547_v56, %v555_v57  ;;  %v560_v1 = vrot.slane %v558_v61, 1  ;;  %v563_v2 = vrot.slane %v561_v62, 2  ;;  %v1237_v31 = vunpack.c.h.b16 %v1362_v12 }
  0x1d   : > { %v375_v4 = vsel %vm372_vm2, %v373_v63, %v374_v0  ;;  %v464_v18 = vsel %vm372_vm2, %v461_v54, %v463_v3  ;;  %v377_v29 = vsel %vm372_vm2, %v374_v0, %v376_v24  ;;  %v380_v34 = vrot.slane %v1362_v12, 1 }
  0x1e   : > { %v564_v17 = vor.u32 %v563_v2, %v560_v1  ;;  %v382_v35 = vrot.slane %v1383_v21, 1  ;;  %v1474_v36 = vpack.c.b16 %v1369_v15, %v1237_v31  ;;  %v378_v40 = vrot.slane %v1355_v7, 1 }
  0x1f   : > { %v829_v46 = vrot.slane %v235_v10, 3  ;;  %v828_v21 = vrot.slane %v239_v11, 2  ;;  %v662_v48 = vrot.slane %v1417_v41, 2  ;;  %v663_v49 = vrot.slane %v1420_v42, 2 }
  0x20   : > { %v565_v20 = vsel %vm539_vm3, %v555_v57, %v564_v17  ;;  %v383_v37 = vsel %vm372_vm2, %v380_v34, %v382_v35  ;;  %v576_v38 = vshrl.u32 %v1474_v36, 16  ;;  %v579_v39 = vshll.u32 %v1474_v36, 16 }
  0x21   : > { %v467_v15 = vrot.slane %v1474_v36, 1  ;;  %v379_v47 = vsel %vm372_vm2, %v376_v24, %v378_v40  ;;  %v825_v50 = vrot.slane %v231_v9, 2  ;;  %v664_v52 = vsel %vm661_vm4, %v662_v48, %v663_v49 }
  0x22   : > { %v578_v44 = vrot.slane %v576_v38, 1  ;;  %v581_v45 = vrot.slane %v579_v39, 2  ;;  %v1241_v11 = vunpack.c.h.b16 %v1365_v13  ;;  %v826_v41 = vrot.slane %v227_v8, 3 }
  0x23   : > { %v830_v42 = vor.u32 %v829_v46, %v828_v21  ;;  %v665_v54 = vrot.slane %v1440_v60, 2  ;;  %v381_v63 = vsel %vm372_vm2, %v378_v40, %v380_v34  ;;  %v927_v2 = vrot.slane %v1349_v5, 3  ;;  %v184_v46 = vld [vmem:[%s1346_s27 + $0x30] sm:$0xf] }
  0x24   : > { %v582_v51 = vor.u32 %v581_v45, %v578_v44  ;;  %v827_v53 = vor.u32 %v826_v41, %v825_v50  ;;  %v844_v35 = vshll.u32 %v1365_v13, 16  ;;  %v669_v44 = vrot.slane %v1474_v36, 2 }
  0x25   : > { %v666_v57 = vsel %vm661_vm4, %v663_v49, %v665_v54  ;;  %v750_v45 = vrot.slane %v1362_v12, 2  ;;  %v742_v48 = vunpack.c.l.b16 %v184_v46 }
  0x26   : > { %v831_v56 = vsel %vm824_vm5, %v827_v53, %v830_v42  ;;  %v846_v40 = vrot.slane %v844_v35, 3 }
  0x27   : > { %1119 = vmatmul.msk.bf16.gmra.mxu2 %vm269_vm1, %v254_v55  ;;  %1125 = vmatmul.msk.bf16.vlgmr.msrb.gmra.mxu1 %vm269_vm1, %v1377_v19  ;;  %v1456_v19 = vld [vmem:[%s1346_s27 + $0x1c] sm:$0xff]   ;;  %v1502_v55 = vpack.c.b16 %v1241_v11, %v1241_v11  ;;  %v934_v11 = vrot.slane %v1365_v13, 3  ;;  %v744_v36 = vpack.c.b16 %v742_v48, %v742_v48 }
  0x28   : > { %v567_v22 = vshrl.u32 %v1456_v19, 16  ;;  %v570_v23 = vshll.u32 %v1456_v19, 16  ;;  %v465_v28 = vrot.slane %v1456_v19, 1 }
  0x29   : > { %1158 = vmatmul.msk.bf16.vlgmr.msrb.gmra.mxu0 %vm269_vm1, %v556_v59  ;;  %v588_v8 = vshll.u32 %v1502_v55, 16  ;;  %v469_v62 = vrot.slane %v1502_v55, 1  ;;  %v850_v53 = vshrl.u32 %v744_v36, 16 }
  0x2a   : > { %1147 = vmatmul.msk.bf16.vlgmr.msrb.gmra.mxu3 %vm269_vm1, %v462_v58  ;;  %v569_v26 = vrot.slane %v567_v22, 1  ;;  %v572_v27 = vrot.slane %v570_v23, 2  ;;  %v466_v32 = vsel %vm372_vm2, %v463_v3, %v465_v28  ;;  %v468_v10 = vsel %vm372_vm2, %v465_v28, %v467_v15 }
  0x2b   : > { %v585_v58 = vshrl.u32 %v1502_v55, 16  ;;  %v590_v61 = vrot.slane %v588_v8, 2  ;;  %v470_v60 = vsel %vm372_vm2, %v467_v15, %v469_v62  ;;  %v928_v3 = vrot.slane %v1352_v6, 3 }
  0x2c   : > { %v573_v30 = vor.u32 %v572_v27, %v569_v26  ;;  %v746_v22 = vrot.slane %v1352_v6, 2  ;;  %v930_v26 = vrot.slane %v1355_v7, 3  ;;  %v748_v28 = vrot.slane %v1355_v7, 2 }
  0x2d   : > { %v587_v59 = vrot.slane %v585_v58, 1  ;;  %v852_v8 = vrot.slane %v850_v53, 2  ;;  %v752_v62 = vrot.slane %v1365_v13, 2 }
  0x2e   : > { %v574_v33 = vsel %vm539_vm3, %v564_v17, %v573_v30  ;;  %v583_v9 = vsel %vm539_vm3, %v573_v30, %v582_v51  ;;  %v832_v17 = vrot.slane %v247_v43, 2  ;;  %v931_v43 = vsel %vm926_vm6, %v928_v3, %v930_v26 }
  0x2f   : > { %v591_v0 = vor.u32 %v590_v61, %v587_v59  ;;  %v671_v61 = vrot.slane %v1502_v55, 2 }
  0x31   : > { %v592_v1 = vsel %vm539_vm3, %v582_v51, %v591_v0  ;;  %v751_v51 = vsel %vm661_vm4, %v748_v28, %v750_v45 }
  0x37   : > { %1126 = vmatmul.msk.bf16.gmra.mxu1 %vm269_vm1, %v1349_v5  ;;  %1136 = vmatmul.msk.bf16.vlgmr.msrb.gmra.mxu2 %vm269_vm1, %v375_v4  ;;  %v929_v4 = vsel %vm926_vm6, %v927_v2, %v928_v3  ;;  %v672_v2 = vsel %vm661_vm4, %v669_v44, %v671_v61  ;;  %v753_v3 = vsel %vm661_vm4, %v750_v45, %v752_v62 }
  0x39   : > { %1159 = vmatmul.msk.bf16.gmra.mxu0 %vm269_vm1, %v565_v20  ;;  %v745_v20 = vrot.slane %v1349_v5, 2  ;;  %v836_v5 = vrot.slane %v255_v25, 2 }
  0x3a   : > { %1148 = vmatmul.msk.bf16.gmra.mxu3 %vm269_vm1, %v464_v18  ;;  %v833_v18 = vrot.slane %v243_v14, 3  ;;  %v667_v14 = vrot.slane %v1456_v19, 2 }
  0x3b   : > { %v747_v24 = vsel %vm661_vm4, %v745_v20, %v746_v22 }
  0x3c   : > { %v834_v23 = vor.u32 %v833_v18, %v832_v17  ;;  %v668_v31 = vsel %vm661_vm4, %v665_v54, %v667_v14  ;;  %v670_v50 = vsel %vm661_vm4, %v667_v14, %v669_v44  ;;  %v853_v54 = vshll.u32 %v744_v36, 16 }
  0x3d   : > { %v936_v18 = vrot.slane %v744_v36, 3 }
  0x3e   : > { %v835_v27 = vsel %vm824_vm5, %v830_v42, %v834_v23  ;;  %v855_v59 = vrot.slane %v853_v54, 3 }
  0x47   : > { %1127 = vmatmul.msk.bf16.gmra.mxu1 %vm269_vm1, %v1352_v6  ;;  %1137 = vmatmul.msk.bf16.gmra.mxu2 %vm269_vm1, %v377_v29  ;;  %v837_v6 = vrot.slane %v251_v16, 3 }
  0x49   : > { %1160 = vmatmul.msk.bf16.gmra.mxu0 %vm269_vm1, %v574_v33  ;;  %v838_v29 = vor.u32 %v837_v6, %v836_v5  ;;  %v932_v33 = vrot.slane %v1362_v12, 3  ;;  %v754_v6 = vrot.slane %v744_v36, 2 }
  0x4a   : > { %1149 = vmatmul.msk.bf16.gmra.mxu3 %vm269_vm1, %v466_v32  ;;  %v749_v32 = vsel %vm661_vm4, %v746_v22, %v748_v28 }
  0x4b   : > { %v839_v25 = vsel %vm824_vm5, %v834_v23, %v838_v29  ;;  %v933_v19 = vsel %vm926_vm6, %v930_v26, %v932_v33  ;;  %v935_v42 = vsel %vm926_vm6, %v932_v33, %v934_v11 }
  0x57   : > { %1128 = vmatmul.msk.bf16.gmra.mxu1 %vm269_vm1, %v1355_v7  ;;  %1138 = vmatmul.msk.bf16.gmra.mxu2 %vm269_vm1, %v379_v47  ;;  %v841_v7 = vshrl.u32 %v1365_v13, 16  ;;  %v937_v13 = vsel %vm926_vm6, %v934_v11, %v936_v18 }
  0x59   : > { %1161 = vmatmul.msk.bf16.gmra.mxu0 %vm269_vm1, %v583_v9  ;;  %v843_v39 = vrot.slane %v841_v7, 2 }
  0x5a   : > { %1150 = vmatmul.msk.bf16.gmra.mxu3 %vm269_vm1, %v468_v10 }
  0x5b   : > { %v847_v47 = vor.u32 %v846_v40, %v843_v39 }
  0x67   : > { %1129 = vmatmul.msk.bf16.gmra.mxu1 %vm269_vm1, %v1362_v12  ;;  %1139 = vmatmul.msk.bf16.gmra.mxu2 %vm269_vm1, %v381_v63  ;;  %v848_v12 = vsel %vm824_vm5, %v838_v29, %v847_v47 }
  0x69   : > { %1162 = vmatmul.msk.bf16.gmra.mxu0 %vm269_vm1, %v592_v1 }
  0x6a   : > { %1151 = vmatmul.msk.bf16.gmra.mxu3 %vm269_vm1, %v470_v60  ;;  %v856_v60 = vor.u32 %v855_v59, %v852_v8 }
  0x6c   : > { %v857_v20 = vsel %vm824_vm5, %v847_v47, %v856_v60 }
  0x77   : > { %1140 = vmatmul.msk.bf16.gmra.mxu2 %vm269_vm1, %v383_v37  ;;  %1169 = vmatmul.msk.bf16.vlgmr.msra.gmra.mxu1 %vm269_vm1, %v664_v52 }
  0x79   : > { %1202 = vmatmul.msk.bf16.vlgmr.msra.gmra.mxu0 %vm269_vm1, %v929_v4 }
  0x7a   : > { %1191 = vmatmul.msk.bf16.vlgmr.msra.gmra.mxu3 %vm269_vm1, %v831_v56 }
  0x87   : > { %1170 = vmatmul.msk.bf16.gmra.mxu1 %vm269_vm1, %v666_v57  ;;  %1180 = vmatmul.msk.bf16.vlgmr.msra.gmra.mxu2 %vm269_vm1, %v747_v24 }
  0x89   : > { %1203 = vmatmul.msk.bf16.gmra.mxu0 %vm269_vm1, %v931_v43 }
  0x8a   : > { %1192 = vmatmul.msk.bf16.gmra.mxu3 %vm269_vm1, %v835_v27 }
  0x94   : > { %v299_v30 = vpop.f32.mrf.mxu1 }
  0x96   : > { %v294_v16 = vpop.f32.mrf.mxu0 }
  0x97   : > { %1171 = vmatmul.msk.bf16.gmra.mxu1 %vm269_vm1, %v668_v31  ;;  %1181 = vmatmul.msk.bf16.gmra.mxu2 %vm269_vm1, %v749_v32  ;;  %v755_v31 = vsel %vm661_vm4, %v752_v62, %v754_v6 }
  0x99   : > { %1204 = vmatmul.msk.bf16.gmra.mxu0 %vm269_vm1, %v933_v19 }
  0x9a   : > { %v1552_v34 = vpop.f32.mrf.mxu2  ;;  %1193 = vmatmul.msk.bf16.gmra.mxu3 %vm269_vm1, %v839_v25 }
  0x9c   : > { %v301_v37 = vpop.f32.mrf.mxu1 }
  0x9d   : > { %v1558_v38 = vpop.f32.mrf.mxu3 }
  0x9e   : > { %v296_v21 = vpop.f32.mrf.mxu0 }
  0xa2   : > { %v1563_v15 = vpop.f32.mrf.mxu2 }
  0xa4   : > { %v344_v49 = vpop.f32.mrf.mxu1 }
  0xa5   : > { %v345_v52 = vadd.f32 %v344_v49, %v294_v16  ;;  %v1567_v10 = vpop.f32.mrf.mxu3 }
  0xa6   : > { %v623_v41 = vpop.f32.mrf.mxu0 }
  0xa7   : > { %1172 = vmatmul.msk.bf16.gmra.mxu1 %vm269_vm1, %v670_v50  ;;  %1182 = vmatmul.msk.bf16.gmra.mxu2 %vm269_vm1, %v751_v51 }
  0xa9   : > { %1205 = vmatmul.msk.bf16.gmra.mxu0 %vm269_vm1, %v935_v42 }
  0xaa   : > { %v309_v9 = vpop.f32.mrf.mxu2  ;;  %1194 = vmatmul.msk.bf16.gmra.mxu3 %vm269_vm1, %v848_v12 }
  0xac   : > { %v346_v56 = vpop.f32.mrf.mxu1 }
  0xad   : > { %v347_v57 = vadd.f32 %v346_v56, %v296_v21  ;;  %v501_v58 = vpop.f32.mrf.mxu3 }
  0xae   : > { %v625_v63 = vpop.f32.mrf.mxu0 }
  0xb2   : > { %v311_v0 = vpop.f32.mrf.mxu2 }
  0xb4   : > { %v349_v1 = vpop.f32.mrf.mxu1 }
  0xb5   : > { %v350_v4 = vadd.f32 %v349_v1, %v299_v30  ;;  %v503_v17 = vpop.f32.mrf.mxu3 }
  0xb6   : > { %v628_v55 = vpop.f32.mrf.mxu0 }
  0xb7   : > { %1173 = vmatmul.msk.bf16.gmra.mxu1 %vm269_vm1, %v672_v2  ;;  %1183 = vmatmul.msk.bf16.gmra.mxu2 %vm269_vm1, %v753_v3 }
  0xb9   : > { %1206 = vmatmul.msk.bf16.gmra.mxu0 %vm269_vm1, %v937_v13 }
  0xba   : > { %v414_v22 = vpop.f32.mrf.mxu2  ;;  %1195 = vmatmul.msk.bf16.gmra.mxu3 %vm269_vm1, %v857_v20 }
  0xbb   : > { %v439_v23 = vadd.f32 %v414_v22, %v345_v52 }
  0xbc   : > { %v351_v24 = vpop.f32.mrf.mxu1 }
  0xbd   : > { %v526_v26 = vadd.f32 %v501_v58, %v439_v23  ;;  %v352_v27 = vadd.f32 %v351_v24, %v301_v37  ;;  %v506_v43 = vpop.f32.mrf.mxu3 }
  0xbe   : > { %v630_v14 = vpop.f32.mrf.mxu0 }
  0xbf   : > { %v1586_v5 = vadd.f32 %v623_v41, %v526_v26 }
  0xc2   : > { %v416_v28 = vpop.f32.mrf.mxu2 }
  0xc3   : > { %v440_v29 = vadd.f32 %v416_v28, %v347_v57 }
  0xc4   : > { %v354_v30 = vpop.f32.mrf.mxu1 }
  0xc5   : > { %v527_v32 = vadd.f32 %v503_v17, %v440_v29  ;;  %v355_v33 = vadd.f32 %v354_v30, %v1552_v34  ;;  %v508_v25 = vpop.f32.mrf.mxu3 }
  0xc6   : > { %v633_v19 = vpop.f32.mrf.mxu0 }
  0xc7   : > { %1184 = vmatmul.msk.bf16.gmra.mxu2 %vm269_vm1, %v755_v31  ;;  %v1591_v16 = vadd.f32 %v625_v63, %v527_v32 }
  0xca   : > { %v419_v7 = vpop.f32.mrf.mxu2 }
  0xcb   : > { %v441_v35 = vadd.f32 %v419_v7, %v350_v4 }
  0xcc   : > { %v356_v37 = vpop.f32.mrf.mxu1 }
  0xcd   : > { %v528_v39 = vadd.f32 %v506_v43, %v441_v35  ;;  %v357_v40 = vadd.f32 %v356_v37, %v1563_v15  ;;  %v511_v44 = vpop.f32.mrf.mxu3  ;;  %v1616_v37 = vld [vmem:[%s1668_s2] ss:$0 sm:$0xff] }
  0xce   : > { %v635_v46 = vpop.f32.mrf.mxu0 }
  0xcf   : > { %v1594_v45 = vadd.f32 %v628_v55, %v528_v39 }
  0xd2   : > { %v421_v21 = vpop.f32.mrf.mxu2 }
  0xd3   : > { %v442_v47 = vadd.f32 %v421_v21, %v352_v27 }
  0xd4   : > { %v359_v48 = vpop.f32.mrf.mxu1 }
  0xd5   : > { %v529_v34 = vadd.f32 %v508_v25, %v442_v47  ;;  %v360_v49 = vadd.f32 %v359_v48, %v309_v9  ;;  %v513_v50 = vpop.f32.mrf.mxu3 }
  0xd6   : > { %v638_v52 = vpop.f32.mrf.mxu0 }
  0xd7   : > { %v1596_v51 = vadd.f32 %v630_v14, %v529_v34 }
  0xda   : > { %v424_v11 = vpop.f32.mrf.mxu2 }
  0xdb   : > { %v443_v12 = vadd.f32 %v424_v11, %v355_v33 }
  0xdc   : > { %v361_v36 = vpop.f32.mrf.mxu1 }
  0xdd   : > { %v530_v41 = vadd.f32 %v511_v44, %v443_v12  ;;  %v362_v42 = vadd.f32 %v361_v36, %v311_v0  ;;  %v516_v53 = vpop.f32.mrf.mxu3 }
  0xde   : > { %v640_v54 = vpop.f32.mrf.mxu0 }
  0xdf   : > { %v1598_v15 = vadd.f32 %v633_v19, %v530_v41 }
  0xe2   : > { %v426_v56 = vpop.f32.mrf.mxu2 }
  0xe3   : > { %v444_v57 = vadd.f32 %v426_v56, %v357_v40 }
  0xe4   : > { %v364_v58 = vpop.f32.mrf.mxu1 }
  0xe5   : > { %v531_v8 = vadd.f32 %v513_v50, %v444_v57  ;;  %v365_v59 = vadd.f32 %v364_v58, %v1558_v38  ;;  %v518_v9 = vpop.f32.mrf.mxu3 }
  0xe6   : > { %v643_v62 = vpop.f32.mrf.mxu0 }
  0xe7   : > { %v1601_v61 = vadd.f32 %v635_v46, %v531_v8 }
  0xea   : > { %v429_v63 = vpop.f32.mrf.mxu2 }
  0xeb   : > { %v445_v60 = vadd.f32 %v429_v63, %v360_v49 }
  0xec   : > { %v366_v1 = vpop.f32.mrf.mxu1 }
  0xed   : > { %v532_v2 = vadd.f32 %v516_v53, %v445_v60  ;;  %v367_v0 = vadd.f32 %v366_v1, %v1567_v10  ;;  %v521_v3 = vpop.f32.mrf.mxu3 }
  0xee   : > { %v645_v18 = vpop.f32.mrf.mxu0 }
  0xef   : > { %v1604_v4 = vadd.f32 %v638_v52, %v532_v2 }
  0xf2   : > { %v431_v17 = vpop.f32.mrf.mxu2 }
  0xf3   : > { %v446_v20 = vadd.f32 %v431_v17, %v362_v42 }
  0xf4   : > { %v703_v55 = vpop.f32.mrf.mxu1 }
  0xf5   : > { %v533_v13 = vadd.f32 %v518_v9, %v446_v20  ;;  %v523_v22 = vpop.f32.mrf.mxu3  ;;  %v728_v25 = vadd.f32 %v703_v55, %v1586_v5 }
  0xf6   : > { %v968_v26 = vpop.f32.mrf.mxu0 }
  0xf7   : > { %v1606_v38 = vadd.f32 %v640_v54, %v533_v13 }
  0xfa   : > { %v434_v23 = vpop.f32.mrf.mxu2 }
  0xfb   : > { %v447_v24 = vadd.f32 %v434_v23, %v365_v59 }
  0xfc   : > { %v705_v6 = vpop.f32.mrf.mxu1 }
  0xfd   : > { %v534_v27 = vadd.f32 %v521_v3, %v447_v24  ;;  %v888_v43 = vpop.f32.mrf.mxu3  ;;  %v729_v46 = vadd.f32 %v705_v6, %v1591_v16 }
  0xfe   : > { %v970_v31 = vpop.f32.mrf.mxu0 }
  0xff   : > { %v1608_v14 = vadd.f32 %v643_v62, %v534_v27 }
 0x102   : > { %v436_v10 = vpop.f32.mrf.mxu2 }
 0x103   : > { %v448_v28 = vadd.f32 %v436_v10, %v367_v0 }
 0x104   : > { %v708_v33 = vpop.f32.mrf.mxu1 }
 0x105   : > { %v535_v29 = vadd.f32 %v523_v22, %v448_v28  ;;  %v890_v30 = vpop.f32.mrf.mxu3  ;;  %v730_v11 = vadd.f32 %v708_v33, %v1594_v45 }
 0x106   : > { %v973_v44 = vpop.f32.mrf.mxu0 }
 0x107   : > { %v1610_v32 = vadd.f32 %v645_v18, %v535_v29 }
 0x10a   : > { %v786_v19 = vpop.f32.mrf.mxu2 }
 0x10b   : > { %v811_v7 = vadd.f32 %v786_v19, %v728_v25 }
 0x10c   : > { %v710_v47 = vpop.f32.mrf.mxu1 }
 0x10d   : > { %v913_v35 = vadd.f32 %v888_v43, %v811_v7  ;;  %v893_v39 = vpop.f32.mrf.mxu3  ;;  %v731_v8 = vadd.f32 %v710_v47, %v1596_v51 }
 0x10e   : > { %v975_v41 = vpop.f32.mrf.mxu0 }
 0x10f   : > { %v993_v40 = vadd.f32 %v968_v26, %v913_v35 }
 0x111   : > { %v1007_v21 = vadd.f32 %v1616_v37, %v993_v40 }
 0x112   : > { %v788_v48 = vpop.f32.mrf.mxu2 }
 0x113   : > { %v1017_v34 = vmax.f32 %v1007_v21, 0.0  ;;  %v812_v5 = vadd.f32 %v788_v48, %v729_v46 }
 0x114   : > { %v713_v54 = vpop.f32.mrf.mxu1 }
 0x115   : > { %v1027_v49 = vpack.c.bf16 %v1017_v34, %v1017_v34  ;;  %v914_v50 = vadd.f32 %v890_v30, %v812_v5  ;;  %v895_v16 = vpop.f32.mrf.mxu3  ;;  %v732_v17 = vadd.f32 %v713_v54, %v1598_v15 }
 0x116   : > { %v978_v60 = vpop.f32.mrf.mxu0 }
 0x117   : > { %1038 = vst.msk [vmem:[%s1624_s16] sm:$0xf] %vm1037_vm7, %v1027_v49  ;;  %v994_v52 = vadd.f32 %v970_v31, %v914_v50 }
 0x119   : > { %v1008_v12 = vadd.f32 %v1616_v37, %v994_v52 }
 0x11a   : > { %v791_v36 = vpop.f32.mrf.mxu2 }
 0x11b   : > { %v1018_v42 = vmax.f32 %v1008_v12, 0.0  ;;  %v813_v53 = vadd.f32 %v791_v36, %v730_v11 }
 0x11c   : > { %v715_v0 = vpop.f32.mrf.mxu1 }
 0x11d   : > { %v1028_v56 = vpack.c.bf16 %v1018_v42, %v1018_v42  ;;  %v915_v57 = vadd.f32 %v893_v39, %v813_v53  ;;  %v898_v62 = vpop.f32.mrf.mxu3  ;;  %v733_v43 = vadd.f32 %v715_v0, %v1601_v61 }
 0x11e   : > { %v980_v24 = vpop.f32.mrf.mxu0 }
 0x11f   : > { %1039 = vst.msk [vmem:[%s1624_s16 + $0x4] sm:$0xf] %vm1037_vm7, %v1028_v56  ;;  %v995_v58 = vadd.f32 %v973_v44, %v915_v57 }
 0x121   : > { %v1009_v59 = vadd.f32 %v1616_v37, %v995_v58 }
 0x122   : > { %v793_v9 = vpop.f32.mrf.mxu2 }
 0x123   : > { %v1019_v45 = vmax.f32 %v1009_v59, 0.0  ;;  %v814_v63 = vadd.f32 %v793_v9, %v731_v8 }
 0x124   : > { %v718_v27 = vpop.f32.mrf.mxu1 }
 0x125   : > { %v1029_v1 = vpack.c.bf16 %v1019_v45, %v1019_v45  ;;  %v916_v2 = vadd.f32 %v895_v16, %v814_v63  ;;  %v900_v13 = vpop.f32.mrf.mxu3  ;;  %v734_v19 = vadd.f32 %v718_v27, %v1604_v4 }
 0x126   : > { %v983_v25 = vpop.f32.mrf.mxu0 }
 0x127   : > { %1040 = vst.msk [vmem:[%s1624_s16 + $0x8] sm:$0xf] %vm1037_vm7, %v1029_v1  ;;  %v996_v3 = vadd.f32 %v975_v41, %v916_v2 }
 0x129   : > { %v1010_v18 = vadd.f32 %v1616_v37, %v996_v3 }
 0x12a   : > { %v796_v20 = vpop.f32.mrf.mxu2 }
 0x12b   : > { %v1020_v51 = vmax.f32 %v1010_v18, 0.0  ;;  %v815_v55 = vadd.f32 %v796_v20, %v732_v17 }
 0x12c   : > { %v720_v35 = vpop.f32.mrf.mxu1 }
 0x12d   : > { %v1030_v22 = vpack.c.bf16 %v1020_v51, %v1020_v51  ;;  %v917_v23 = vadd.f32 %v898_v62, %v815_v55  ;;  %v903_v31 = vpop.f32.mrf.mxu3  ;;  %v735_v48 = vadd.f32 %v720_v35, %v1606_v38 }
 0x12e   : > { %v985_v5 = vpop.f32.mrf.mxu0 }
 0x12f   : > { %1041 = vst.msk [vmem:[%s1624_s16 + $0xc] sm:$0xf] %vm1037_vm7, %v1030_v22  ;;  %v997_v26 = vadd.f32 %v978_v60, %v917_v23 }
 0x131   : > { %v1011_v6 = vadd.f32 %v1616_v37, %v997_v26 }
 0x132   : > { %v798_v10 = vpop.f32.mrf.mxu2 }
 0x133   : > { %v1021_v15 = vmax.f32 %v1011_v6, 0.0  ;;  %v816_v28 = vadd.f32 %v798_v10, %v733_v43 }
 0x134   : > { %v723_v52 = vpop.f32.mrf.mxu1 }
 0x135   : > { %v1031_v29 = vpack.c.bf16 %v1021_v15, %v1021_v15  ;;  %v918_v30 = vadd.f32 %v900_v13, %v816_v28  ;;  %v905_v47 = vpop.f32.mrf.mxu3  ;;  %v736_v36 = vadd.f32 %v723_v52, %v1608_v14 }
 0x136   : > { %v988_v56 = vpop.f32.mrf.mxu0 }
 0x137   : > { %1042 = vst.msk [vmem:[%s1624_s16 + $0x10] sm:$0xf] %vm1037_vm7, %v1031_v29  ;;  %v998_v33 = vadd.f32 %v980_v24, %v918_v30 }
 0x139   : > { %v1012_v7 = vadd.f32 %v1616_v37, %v998_v33 }
 0x13a   : > { %v801_v39 = vpop.f32.mrf.mxu2 }
 0x13b   : > { %v1022_v61 = vmax.f32 %v1012_v7, 0.0  ;;  %v817_v40 = vadd.f32 %v801_v39, %v734_v19 }
 0x13c   : > { %v725_v8 = vpop.f32.mrf.mxu1 }
 0x13d   : > { %v1032_v44 = vpack.c.bf16 %v1022_v61, %v1022_v61  ;;  %v919_v46 = vadd.f32 %v903_v31, %v817_v40  ;;  %v908_v42 = vpop.f32.mrf.mxu3  ;;  %v737_v9 = vadd.f32 %v725_v8, %v1610_v32 }
 0x13e   : > { %v990_v0 = vpop.f32.mrf.mxu0 }
 0x13f   : > { %1043 = vst.msk [vmem:[%s1624_s16 + $0x14] sm:$0xf] %vm1037_vm7, %v1032_v44  ;;  %v999_v21 = vadd.f32 %v983_v25, %v919_v46 }
 0x141   : > { %v1013_v34 = vadd.f32 %v1616_v37, %v999_v21 }
 0x142   : > { %v803_v49 = vpop.f32.mrf.mxu2 }
 0x143   : > { %v1023_v4 = vmax.f32 %v1013_v34, 0.0  ;;  %v818_v50 = vadd.f32 %v803_v49, %v735_v48 }
 0x145   : > { %v1033_v16 = vpack.c.bf16 %v1023_v4, %v1023_v4  ;;  %v920_v11 = vadd.f32 %v905_v47, %v818_v50  ;;  %v910_v60 = vpop.f32.mrf.mxu3 }
 0x147   : > { %1044 = vst.msk [vmem:[%s1624_s16 + $0x18] sm:$0xf] %vm1037_vm7, %v1033_v16  ;;  %v1000_v12 = vadd.f32 %v985_v5, %v920_v11 }
 0x149   : > { %v1014_v41 = vadd.f32 %v1616_v37, %v1000_v12 }
 0x14a   : > { %v806_v53 = vpop.f32.mrf.mxu2 }
 0x14b   : > { %v1024_v38 = vmax.f32 %v1014_v41, 0.0  ;;  %v819_v54 = vadd.f32 %v806_v53, %v736_v36 }
 0x14d   : > { %v1034_v57 = vpack.c.bf16 %v1024_v38, %v1024_v38  ;;  %v921_v58 = vadd.f32 %v908_v42, %v819_v54 }
 0x14f   : > { %1045 = vst.msk [vmem:[%s1624_s16 + $0x1c] sm:$0xf] %vm1037_vm7, %v1034_v57  ;;  %v1001_v59 = vadd.f32 %v988_v56, %v921_v58 }
 0x151   : > { %v1015_v62 = vadd.f32 %v1616_v37, %v1001_v59 }
 0x152   : > { %v808_v14 = vpop.f32.mrf.mxu2 }
 0x153   : > { %v1025_v45 = vmax.f32 %v1015_v62, 0.0  ;;  %v820_v63 = vadd.f32 %v808_v14, %v737_v9 }
 0x155   : > { %v1035_v1 = vpack.c.bf16 %v1025_v45, %v1025_v45  ;;  %v922_v2 = vadd.f32 %v910_v60, %v820_v63 }
 0x157   : > { %1046 = vst.msk [vmem:[%s1624_s16 + $0x20] sm:$0xf] %vm1037_vm7, %v1035_v1  ;;  %v1002_v3 = vadd.f32 %v990_v0, %v922_v2 }
 0x159   : > { %v1016_v17 = vadd.f32 %v1616_v37, %v1002_v3 }
 0x15b   : > { %v1026_v18 = vmax.f32 %v1016_v17, 0.0 }
 0x15d   : > { %v1036_v20 = vpack.c.bf16 %v1026_v18, %v1026_v18 }
 0x15f   : > { %1047 = vst.msk [vmem:[%s1624_s16 + $0x24] sm:$0xf] %vm1037_vm7, %v1036_v20 }
 0x160 PF: > { %s13_s12 = sadd.s32 1, %s1295_s12  }
 0x161   : > { %p10_p4 = scmp.ge.s32.totalorder %s13_s12, 4  }
 0x163   :  { %12 = sbr.rel (!%p10_p4) target bundleno = 1 (0x1), region = 70 }

</bundles_post_ra>
